<compile_context>
chip_gen: v5e
topology: v5e:2x2
jax: 0.10.0
libtpu: 0.0.40
codegen_flags: <defaults>
</compile_context>

<pallas_src>
import functools

import jax
import jax.numpy as jnp
from jax.experimental import pallas as pl
from jax.experimental.pallas import tpu as pltpu


# ---------------------------------------------------------------------------
# Buffer construction (module __init__ equivalent)
# ---------------------------------------------------------------------------

def make_rope_buffers(d_model, seq_len_max):
    """The module's registered buffers, as (S_max, d_model//2) f32 tables."""
    theta = 1.0 / (10000.0 ** (jnp.arange(0, d_model, 2, dtype=jnp.float32) / d_model))
    pos = jnp.arange(seq_len_max, dtype=jnp.float32)[:, None]
    ang = pos * theta
    return jnp.sin(ang), jnp.cos(ang)


def make_rope_kernel_buffers(sin, cos, trig_dtype=jnp.float32):
    """One-time prep (buffer-registration time): interleave to (S_max, d_model)
    lane layout, bake the pair signs AND the lane-parity masks into the sin
    tables so the kernel needs no iota / parity select:
        cos_i = [ c0,  c0,  c1,  c1, ...]
        sinE  = [-s0,  0., -s1,  0., ...]   # multiplies x[2j+1] -> out[2j]
        sinO  = [ 0., +s0,  0., +s1, ...]   # multiplies x[2j]   -> out[2j+1]
    Note: trig_dtype=jnp.bfloat16 halves trig HBM/VMEM bytes but loses precision
    at large positions; keep f32 for long-context use (default).
    """
    s_max, dh = sin.shape
    z = jnp.zeros_like(sin)
    cos_i = jnp.repeat(cos, 2, axis=-1)
    sin_e = jnp.stack([-sin, z], axis=-1).reshape(s_max, 2 * dh)
    sin_o = jnp.stack([z, sin], axis=-1).reshape(s_max, 2 * dh)
    return (cos_i.astype(trig_dtype), sin_e.astype(trig_dtype),
            sin_o.astype(trig_dtype))


# ---------------------------------------------------------------------------
# Kernel
# ---------------------------------------------------------------------------

def _rope_kernel(cos_ref, sine_ref, sino_ref, x_ref, o_ref, *, compute_dtype):
    # cos/sinE/sinO : (tile_s, d_model) pre-baked trig tables
    # x_ref / o_ref : (1, tile_s, d_model) interleaved even/odd pairs on lanes
    x = x_ref[0].astype(compute_dtype)
    n = x.shape[-1]
    nxt = pltpu.roll(x, shift=n - 1, axis=1)   # nxt[:, i] = x[:, (i + 1) % n]
    prv = pltpu.roll(x, shift=1, axis=1)       # prv[:, i] = x[:, (i - 1) % n]
    c = cos_ref[...].astype(compute_dtype)
    se = sine_ref[...].astype(compute_dtype)
    so = sino_ref[...].astype(compute_dtype)
    # Wraparound lanes of the rolls are multiplied by the baked zeros in sinE/sinO.
    o_ref[0] = (x * c + nxt * se + prv * so).astype(o_ref.dtype)


# ---------------------------------------------------------------------------
# Wrapper
# ---------------------------------------------------------------------------

def _select_compute_dtype(x_dtype):
    """f32 math by default (v5e has no bf16 VPU); native bf16 math on v6e/v7x
    (halves VPU op count / vreg pressure, relevant where VPU is near-binding)."""
    if jnp.dtype(x_dtype) == jnp.dtype(jnp.bfloat16):
        try:
            kind = jax.devices()[0].device_kind.lower()
        except Exception:
            kind = ""
        if ("v6" in kind) or ("v7" in kind):
            return jnp.bfloat16
    return jnp.float32


def _pick_tile_s(seq_len, d_model, x_itemsize, trig_itemsize,
                 vmem_budget_bytes=24 << 20, max_x_tile_bytes=4 << 20):
    """Largest row-tile whose double-buffered working set (x + out tiles in x
    dtype, cos/sinE/sinO tiles in trig dtype) fits the VMEM budget (24 MiB is
    safe on v7x's 64 MiB physical VMEM) with a per-x-tile cap of ~4 MiB."""
    bytes_per_row = d_model * (2 * x_itemsize + 3 * trig_itemsize)
    cap_budget = max(8, vmem_budget_bytes // (2 * bytes_per_row))
    cap_xtile = max(8, max_x_tile_bytes // max(1, d_model * x_itemsize))
    t = min(seq_len, cap_budget, cap_xtile)
    t -= t % 8
    t = max(t, 8)
    while seq_len % t:
        t -= 8
    return t


def rope_forward(x, cos_i, sin_e, sin_o, seq_len, *, tile_s=None):
    """x: (B, S, d_model//2, 2) with S == seq_len. Returns (B, S, d_model//2, 2)."""
    B, S, Dh, two = x.shape
    d_model = 2 * Dh
    assert two == 2 and S == seq_len
    assert S % 8 == 0, "seq_len must be a multiple of 8"
    # TODO(synk): no masked path for ragged / non-multiple-of-tile sequence lengths.
    assert cos_i.shape == sin_e.shape == sin_o.shape
    assert cos_i.shape[1] == d_model and cos_i.shape[0] >= S

    compute_dtype = _select_compute_dtype(x.dtype)
    x_item = jnp.dtype(x.dtype).itemsize
    trig_item = jnp.dtype(cos_i.dtype).itemsize

    if tile_s is None:
        tile_s = _pick_tile_s(S, d_model, x_item, trig_item)
        # v7x has 2 TensorCores: if the whole problem would be a single grid step,
        # split the row axis so both cores get work.
        if B * (S // tile_s) < 2 and S >= 16 and (S // 2) % 8 == 0:
            tile_s = S // 2
    assert S % tile_s == 0 and tile_s % 8 == 0

    # Free contiguous reshape: (even, odd) pairs become interleaved lanes.
    x_flat = x.reshape(B, S, d_model)

    # Batch innermost -> trig block index constant across it -> trig DMA skipped,
    # tables read from HBM once per forward.  Both axes parallel so a megacore
    # split (v7x) can land on the seq axis (or on batch, at worst duplicating the
    # small trig reads per core).
    grid = (S // tile_s, B)

    # Keep the last block dim a multiple of 128 (here d_model = 512 = 4x128) so
    # output stores stay unmasked lane-dense vst.
    trig_spec = pl.BlockSpec((tile_s, d_model), lambda s, b: (s, 0))
    x_spec = pl.BlockSpec((1, tile_s, d_model), lambda s, b: (b, s, 0))

    # Explicit VMEM budget: double-buffered x/out (x dtype) + 3 trig tiles
    # (trig dtype), plus headroom.  Raises v5e's 16 MiB scoped default; stays
    # well under v7x's 64 MiB physical VMEM.
    working_set = 2 * tile_s * d_model * (2 * x_item + 3 * trig_item)
    vmem_limit = int(min(64 << 20, max(32 << 20, working_set + (8 << 20))))

    out_flat = pl.pallas_call(
        functools.partial(_rope_kernel, compute_dtype=compute_dtype),
        out_shape=jax.ShapeDtypeStruct((B, S, d_model), x.dtype),
        grid=grid,
        in_specs=[trig_spec, trig_spec, trig_spec, x_spec],
        out_specs=x_spec,
        compiler_params=pltpu.CompilerParams(
            dimension_semantics=("parallel", "parallel"),
            vmem_limit_bytes=vmem_limit),
    )(cos_i, sin_e, sin_o, x_flat)

    return out_flat.reshape(B, S, Dh, 2)


# ---------------------------------------------------------------------------
# Reference + demo
# ---------------------------------------------------------------------------

def rope_reference(x, sin, cos, seq_len):
    """Pure-JAX transliteration of the PyTorch forward (for verification)."""
    sin3 = sin[:, :, None]  # (S_max, Dh, 1)
    cos3 = cos[:, :, None]
    x_even = x[..., ::2]
    x_odd = x[..., 1::2]
    rot_even = x_even * cos3[:seq_len] - x_odd * sin3[:seq_len]
    rot_odd = x_even * sin3[:seq_len] + x_odd * cos3[:seq_len]
    return jnp.concatenate([rot_even, rot_odd], axis=-1)


if __name__ == "__main__":
    d_model = 512        # matches the PyTorch module's d_model (lane-dense: 4x128)
    seq_len_max = 256    # small analogue of the module's 1024-entry tables
    B = 2
    S = 128              # actual sequence length passed to forward
    Dh = d_model // 2

    sin, cos = make_rope_buffers(d_model, seq_len_max)
    cos_i, sin_e, sin_o = make_rope_kernel_buffers(sin, cos)

    key = jax.random.PRNGKey(0)
    x = jax.random.normal(key, (B, S, Dh, 2), dtype=jnp.float32)

    out = rope_forward(x, cos_i, sin_e, sin_o, S)
    out = jax.block_until_ready(out)

    ref = rope_reference(x, sin, cos, S)
    assert out.shape == ref.shape == (B, S, Dh, 2)
    assert jnp.allclose(out, ref, atol=1e-6, rtol=1e-6)

    print("KERNEL_OK")
</pallas_src>

<mosaic_0001>
module attributes {stable_mosaic.version = 11 : i64} {
  func.func @_rope_kernel(%arg0: i32, %arg1: i32, %arg2: memref<128x512xf32, #tpu.memory_space<vmem>>, %arg3: memref<128x512xf32, #tpu.memory_space<vmem>>, %arg4: memref<128x512xf32, #tpu.memory_space<vmem>>, %arg5: memref<1x128x512xf32, #tpu.memory_space<vmem>>, %arg6: memref<1x128x512xf32, #tpu.memory_space<vmem>>) attributes {dimension_semantics = [#tpu.dimension_semantics<parallel>, #tpu.dimension_semantics<parallel>], iteration_bounds = array<i64: 1, 2>, scalar_prefetch = 0 : i64, scratch_operands = 0 : i64, tpu.core_type = #tpu.core_type<tc>, window_params = [{transform_indices = @transform_0, window_bounds = array<i64: 128, 512>}, {transform_indices = @transform_1, window_bounds = array<i64: 128, 512>}, {transform_indices = @transform_2, window_bounds = array<i64: 128, 512>}, {transform_indices = @transform_3, window_bounds = array<i64: 1, 128, 512>}, {transform_indices = @transform_4, window_bounds = array<i64: 1, 128, 512>}]} {
    %c0 = arith.constant 0 : index
    %c0_0 = arith.constant 0 : index
    %c0_1 = arith.constant 0 : index
    %0 = vector.load %arg5[%c0, %c0_0, %c0_1] : memref<1x128x512xf32, #tpu.memory_space<vmem>>, vector<1x128x512xf32>
    %1 = vector.shape_cast %0 : vector<1x128x512xf32> to vector<128x512xf32>
    %c511_i32 = arith.constant 511 : i32
    %2 = tpu.dynamic_rotate %1 by %c511_i32 dim 1 : vector<128x512xf32>, i32 -> vector<128x512xf32>
    %c1_i32 = arith.constant 1 : i32
    %3 = tpu.dynamic_rotate %1 by %c1_i32 dim 1 : vector<128x512xf32>, i32 -> vector<128x512xf32>
    %c0_2 = arith.constant 0 : index
    %c0_3 = arith.constant 0 : index
    %4 = vector.load %arg2[%c0_2, %c0_3] : memref<128x512xf32, #tpu.memory_space<vmem>>, vector<128x512xf32>
    %c0_4 = arith.constant 0 : index
    %c0_5 = arith.constant 0 : index
    %5 = vector.load %arg3[%c0_4, %c0_5] : memref<128x512xf32, #tpu.memory_space<vmem>>, vector<128x512xf32>
    %c0_6 = arith.constant 0 : index
    %c0_7 = arith.constant 0 : index
    %6 = vector.load %arg4[%c0_6, %c0_7] : memref<128x512xf32, #tpu.memory_space<vmem>>, vector<128x512xf32>
    %7 = arith.mulf %1, %4 : vector<128x512xf32>
    %8 = arith.mulf %2, %5 : vector<128x512xf32>
    %9 = arith.addf %7, %8 : vector<128x512xf32>
    %10 = arith.mulf %3, %6 : vector<128x512xf32>
    %11 = arith.addf %9, %10 : vector<128x512xf32>
    %c0_8 = arith.constant 0 : index
    %c0_9 = arith.constant 0 : index
    %c0_10 = arith.constant 0 : index
    %12 = vector.load %arg6[%c0_8, %c0_9, %c0_10] : memref<1x128x512xf32, #tpu.memory_space<vmem>>, vector<1x128x512xf32>
    %13 = vector.shape_cast %12 : vector<1x128x512xf32> to vector<128x512xf32>
    %14 = vector.shape_cast %11 : vector<128x512xf32> to vector<1x128x512xf32>
    tpu.vector_store %arg6[%c0_8, %c0_9, %c0_10], %14 {strides = array<i32>} : memref<1x128x512xf32, #tpu.memory_space<vmem>>, vector<1x128x512xf32>,
    return
  }
  func.func @transform_0(%arg0: i32, %arg1: i32) -> (i32, i32) {
    %c0_i32 = arith.constant 0 : i32
    %c0_i32_0 = arith.constant 0 : i32
    return %arg0, %c0_i32 : i32, i32
  }
  func.func @transform_1(%arg0: i32, %arg1: i32) -> (i32, i32) {
    %c0_i32 = arith.constant 0 : i32
    %c0_i32_0 = arith.constant 0 : i32
    return %arg0, %c0_i32 : i32, i32
  }
  func.func @transform_2(%arg0: i32, %arg1: i32) -> (i32, i32) {
    %c0_i32 = arith.constant 0 : i32
    %c0_i32_0 = arith.constant 0 : i32
    return %arg0, %c0_i32 : i32, i32
  }
  func.func @transform_3(%arg0: i32, %arg1: i32) -> (i32, i32, i32) {
    %c0_i32 = arith.constant 0 : i32
    %c0_i32_0 = arith.constant 0 : i32
    return %arg1, %arg0, %c0_i32 : i32, i32, i32
  }
  func.func @transform_4(%arg0: i32, %arg1: i32) -> (i32, i32, i32) {
    %c0_i32 = arith.constant 0 : i32
    %c0_i32_0 = arith.constant 0 : i32
    return %arg1, %arg0, %c0_i32 : i32, i32, i32
  }
}

</mosaic_0001>

<bundles_post_ra>
// kernel: tpu_custom_call.1
= control target key start
LH: loop header
LB: loop body
LE: loop exit
PB: predicated region body
PF: predicated region fallthrough
CT: control target
= control target key end

     0   :  { %s3436_s0 = inlined_call_operand.hbm [shape: f32[256,512], index: 0, kind: input, shape index: {}]   ;;  %s3437_s1 = inlined_call_operand.hbm [shape: f32[256,512], index: 1, kind: input, shape index: {}]   ;;  %s3438_s2 = inlined_call_operand.hbm [shape: f32[256,512], index: 2, kind: input, shape index: {}]   ;;  %s3439_s3 = inlined_call_operand.hbm [shape: f32[2,128,512], index: 3, kind: input, shape index: {}]   ;;  %s3440_s4 = inlined_call_operand.hbm [shape: f32[2,128,512], index: 4, kind: output, shape index: {}]  }
   0x1   :  { %3527 = sst [smem:[#allocation103_spill]] %s3436_s0 }
   0x2   :  { %3528 = sst [smem:[#allocation104_spill]] %s3437_s1 }
   0x3   :  { %9 = vsyncpa [#allocation3], 0 }
   0x4   :  { %10 = vsyncpa [#allocation6], 0 }
   0x5   :  { %11 = vsyncpa [#allocation9], 0 }
   0x6   :  { %13 = vsyncpa [#allocation9 + $0x1], 0 }
   0x7   :  { %14 = vsyncpa [#allocation4], 0 }
   0x8   :  { %16 = vsyncpa [#allocation4 + $0x1], 0  ;;  %s1895_s15 = smov 0   ;;  %s1897_s16 = smov 0  }
   0x9   :  { %s1899_s17 = smov 0   ;;  %s1901_s18 = smov 0  }
   0xa   :  { %s1903_s19 = smov 0   ;;  %s1905_s20 = smov 0  }
   0xb LB: > { %s1490_s21 = sadd.s32 4294967295, %s1859_s20   ;;  %s1491_s22 = sadd.s32 4294967294, %s1859_s20   ;;  %s1859_s20 = sphi %s1905_s20, %s22_s20   ;;  %s1855_s19 = sphi %s1903_s19, %s3744_s19   ;;  %s1851_s18 = sphi %s1901_s18, %s3743_s18   ;;  %s1847_s17 = sphi %s1899_s17, %s3742_s17   ;;  %s1843_s16 = sphi %s1897_s16, %s3741_s16   ;;  %s1839_s15 = sphi %s1895_s15, %s3740_s15  }
   0xc   : > { %p134_p0 = scmp.ne.s32.totalorder %s1843_s16, %s1839_s15  ;;  %p1929_p1 = scmp.eq.s32.totalorder %s1490_s21, 0 }
   0xd   : > { %p1933_p2 = scmp.eq.s32.totalorder %s1490_s21, 1  ;;  %p166_p3 = scmp.eq.s32.totalorder %s1491_s22, 1 }
   0xe   : > { %p1939_p4 = por %p1929_p1, %p134_p0  ;;  %p1492_p5 = scmp.ge.s32.totalorder %s1859_s20, 1 }
   0xf   : > { %p1944_p6 = por %p166_p3, %p134_p0  ;;  %p173_p7 = scmp.lt.s32.totalorder %s1859_s20, 3 }
  0x10   : > { %s3534_s1 = sld [smem:[#allocation104_spill]]  ;;  %s1861_s5 = smov [#allocation5]  }
  0x11   : > { %p1949_p8 = pnand %p1492_p5, %p173_p7  ;;  %s208_s6 = sshll.u32 %s1861_s5, 4  ;;  %s209_s6 = int_to_ptr.vmem [resolvable:$true] %s208_s6 }
  0x12   : > { %p1496_p10 = scmp.ge.s32.totalorder %s1859_s20, 2  ;;  %s3536_s0 = sld [smem:[#allocation103_spill]] }
  0x13   : > { %p1529_p9 = pneg %p1949_p8  ;;  %s3441_s11 = smov 512  }
  0x14   : > { %s3442_s12 = smov 32   ;;  %s1864_s13 = smov [#allocation2]  }
  0x15   : > { %p1961_p11 = pnand %p1529_p9, %p1929_p1  ;;  %s190_s14 = sshll.u32 %s1864_s13, 4  ;;  %s191_s14 = int_to_ptr.vmem [resolvable:$true] %s190_s14 }
  0x16   : > { %s206_s30 = sshll.u32 %s3534_s1, 4  ;;  %s224_s28 = sshll.u32 %s3438_s2, 4  ;;  %s207_s30 = int_to_ptr.hbm [resolvable:$true] %s206_s30  ;;  %s225_s28 = int_to_ptr.hbm [resolvable:$true] %s224_s28 }
  0x17   : > { %1535 = dma.hbm_to_vmem [thread:$0]  (!%p1961_p11), %s207_s30, 8192, %s209_s6, [#allocation6], %s3441_s11, %s3441_s11, %s3442_s12  }
  0x18   : > { %s188_s10 = sshll.u32 %s3536_s0, 4  ;;  %s1865_s29 = smov [#allocation7]   ;;  %s189_s10 = int_to_ptr.hbm [resolvable:$true] %s188_s10 }
  0x19   : > { %1532 = dma.hbm_to_vmem [thread:$0]  (!%p1961_p11), %s189_s10, 8192, %s191_s14, [#allocation3], %s3441_s11, %s3441_s11, %s3442_s12  }
  0x1a   : > { %s226_s30 = sshll.u32 %s1865_s29, 4  ;;  %s31_s5 = sadd.s32 1, %s1855_s19  ;;  %s227_s30 = int_to_ptr.vmem [resolvable:$true] %s226_s30 }
  0x1b   : > { %1538 = dma.hbm_to_vmem [thread:$0]  (!%p1961_p11), %s225_s28, 8192, %s227_s30, [#allocation6], %s3441_s11, %s3441_s11, %s3442_s12  }
  0x1c   : > { %p32_p12 = scmp.ge.s32.totalorder %s31_s5, 2  ;;  %s121_s6 = sadd.s32 1, %s1847_s17 }
  0x1d   : > { %p128_p13 = scmp.ne.s32.totalorder %s1847_s17, %s1843_s16  ;;  %p129_p0 = scmp.eq.s32.totalorder %s1859_s20, 0 }
  0x1e   : > { %s3746_s5 = smov (%p32_p12, %s31_s5), 0  ;;  %p1550_p7 = scmp.lt.s32.totalorder %s1859_s20, 2 }
  0x1f   : > { %p1993_p3 = por %p129_p0, %p128_p13  ;;  %p1999_p5 = por %p1933_p2, %p128_p13 }
  0x20   : > { %s116_s9 = ssub.s32 %s1855_s19, %s3746_s5  ;;  %s240_s10 = sand.u32 1, %s1847_s17  }
  0x21   : > { %p119_p9 = scmp.eq.s32.totalorder %s116_s9, 0  ;;  %s1497_s13 = sshll.u32 %s240_s10, 9 }
  0x22   : > { %s1511_s21 = sshll.u32 %s1855_s19, 9  ;;  %s244_s30 = scalar_lea.vmem [#allocation8], %s1497_s13 }
  0x23   : > { %s2008_s14 = scalar_select %p119_p9, %s1847_s17, %s121_s6  }
  0x24   : > { %s252_s29 = scalar_lea.hbm %s3439_s3, %s1511_s21  ;;  %s255_s11 = sshll.u32 %s244_s30, 4  ;;  %s256_s11 = int_to_ptr.vmem [resolvable:$true] %s255_s11 }
  0x25   : > { %s253_s24 = sshll.u32 %s252_s29, 4  ;;  %p1540_p2 = pnand %p1550_p7, %p1993_p3  ;;  %s254_s24 = int_to_ptr.hbm [resolvable:$true] %s253_s24 }
  0x26   : > { %s241_s12 = scalar_lea.sflag [#allocation9], %s240_s10  ;;  %s3539_s0 = smov 32  }
  0x27   : > { %s3540_s1 = smov 512   ;;  %267 = sbr.rel (%p1949_p8) target bundleno = 526 (0x20e), region = 36 }
  0x28   : > { %1542 = dma.hbm_to_vmem [thread:$0]  (!%p1540_p2), %s254_s24, 8192, %s256_s11, %s241_s12, %s3540_s1, %s3540_s1, %s3539_s0  }
  0x2c   : > { %1822 = dma.done.wait (%p1929_p1), [#allocation3], 8192  }
  0x2d   : > { %1824 = vsyncadd (%p1929_p1), [#allocation3], 4294959104 }
  0x2e   : > { %1826 = dma.done.wait (%p1929_p1), [#allocation6], 16384  }
  0x2f   : > { %1828 = vsyncadd (%p1929_p1), [#allocation6], 4294950912  ;;  %s2030_s6 = sand.u32 1, %s1843_s16  }
  0x30   : > { %s1504_s0 = sshll.u32 %s2030_s6, 9  ;;  %s285_s1 = scalar_lea.sflag [#allocation9], %s2030_s6 }
  0x31   : > { %s2036_s27 = scalar_lea.vmem [#allocation8], %s1504_s0 }
  0x32   : > { %1830 = dma.done.wait (%p1939_p4), %s285_s1, 8192  }
  0x33   : > { %1832 = vsyncadd (%p1939_p4), %s285_s1, 4294959104  ;;  %v2043_v0 = vld [vmem:[%s2036_s27 + $0x80] sm:$0xff]  ;;  %s1866_s23 = smov 127   ;;  %v2118_v15 = vld [vmem:[%s2036_s27 + $0x28] sm:$0xff]  ;;  %s1867_s25 = smov 1  }
  0x34   : > { %v2046_v1 = vld [vmem:[%s2036_s27 + $0x40] sm:$0xff]  ;;  %391 = vrot.lane.b32.xlu2 %v2043_v0, %s1866_s23  ;;  %v2121_v16 = vld [vmem:[%s2036_s27 + $0x8] sm:$0xff]  ;;  %v2193_v30 = vld [vmem:[%s2036_s27 + $0x10] sm:$0xff]  ;;  %s2702_s11 = scalar_lea.vmem [#allocation10], %s1504_s0  ;;  %s1512_s12 = sshll.u32 %s1851_s18, 9 }
  0x35   : > { %387 = vrot.lane.b32.xlu1 %v2046_v1, %s1866_s23  ;;  %v2053_v2 = vld [vmem:[%s2036_s27] sm:$0xff]  ;;  %v2133_v18 = vld [vmem:[%s2036_s27 + $0x88] sm:$0xff]  ;;  %3541 = vst [vmem:[#allocation15_spill] sm:$0xff] %v2193_v30  ;;  %v2208_v33 = vld [vmem:[%s2036_s27 + $0x70] sm:$0xff]  ;;  %s1362_s18 = scalar_lea.hbm %s3440_s4, %s1512_s12  ;;  %s1363_s10 = sshll.u32 %s2702_s11, 4  ;;  %s1364_s10 = int_to_ptr.vmem [resolvable:$true] %s1363_s10 }
  0x36   : > { %383 = vrot.lane.b32.xlu0 %v2053_v2, %s1866_s23  ;;  %v2058_v3 = vld [vmem:[%s2036_s27 + $0xa0] sm:$0xff]  ;;  %v2136_v19 = vld [vmem:[%s2036_s27 + $0x68] sm:$0xff]  ;;  %3542 = vst [vmem:[#allocation16_spill] sm:$0xff] %v2208_v33  ;;  %v2211_v34 = vld [vmem:[%s2036_s27 + $0x50] sm:$0xff]  ;;  %s1365_s13 = sshll.u32 %s1362_s18, 4  ;;  %s1348_s21 = scalar_lea.sflag [#allocation4], %s2030_s6  ;;  %s1366_s13 = int_to_ptr.hbm [resolvable:$true] %s1365_s13 }
  0x37   : > { %v2061_v4 = vld [vmem:[%s2036_s27 + $0x60] sm:$0xff]  ;;  %v2139_v20 = vld [vmem:[%s2036_s27 + $0x48] sm:$0xff]  ;;  %v2214_v35 = vld [vmem:[%s2036_s27 + $0x30] sm:$0xff]  ;;  %s1783_s22 = sshra.s32 %s1366_s13, 4  ;;  %s1789_s24 = scalar_lea.hbm %s3440_s4, 1024  ;;  %s1784_s22 = int_to_ptr.hbm [resolvable:$true] %s1783_s22 }
  0x38   : > { %v2064_v5 = vld [vmem:[%s2036_s27 + $0x20] sm:$0xff]  ;;  %v2148_v21 = vld [vmem:[%s2036_s27 + $0xe8] sm:$0xff]  ;;  %3543 = vst [vmem:[#allocation17_spill] sm:$0xff] %v2214_v35  ;;  %v2225_v37 = vld [vmem:[%s2036_s27 + $0xd0] sm:$0xff]  ;;  %s1785_s28 = scalar_lea.hbm %s1784_s22, 512  ;;  %p1790_p11 = scmp.lt.s32.totalorder %s1784_s22, %s3440_s4 }
  0x39   : > { %v2073_v6 = vld [vmem:[%s2036_s27 + $0x100] sm:$0xff]  ;;  %v2151_v22 = vld [vmem:[%s2036_s27 + $0xc8] sm:$0xff]  ;;  %v2228_v38 = vld [vmem:[%s2036_s27 + $0xb0] sm:$0xff]  ;;  %p1786_p1 = scmp.ne.s32.totalorder %s1784_s22, %s1785_s28  ;;  %p1791_p12 = scmp.lt.s32.totalorder %s1789_s24, %s1785_s28 }
  0x3a   : > { %v2076_v7 = vld [vmem:[%s2036_s27 + $0xe0] sm:$0xff]  ;;  %v2154_v23 = vld [vmem:[%s2036_s27 + $0xa8] sm:$0xff]  ;;  %v2231_v39 = vld [vmem:[%s2036_s27 + $0x90] sm:$0xff] }
  0x3b   : > { %v2079_v8 = vld [vmem:[%s2036_s27 + $0xc0] sm:$0xff]  ;;  %v2163_v24 = vld [vmem:[%s2036_s27 + $0x148] sm:$0xff]  ;;  %3545 = vst [vmem:[#allocation19_spill] sm:$0xff] %v2231_v39  ;;  %v2242_v41 = vld [vmem:[%s2036_s27 + $0x130] sm:$0xff]  ;;  %p1787_p4 = pnand %p1786_p1, %p1999_p5  ;;  %p1792_p13 = por %p1791_p12, %p1790_p11 }
  0x3c   : > { %393 = vrot.lane.b32.xlu2 %v2058_v3, %s1866_s23  ;;  %v2088_v9 = vld [vmem:[%s2036_s27 + $0x160] sm:$0xff]  ;;  %v2166_v25 = vld [vmem:[%s2036_s27 + $0x128] sm:$0xff]  ;;  %v2245_v42 = vld [vmem:[%s2036_s27 + $0x110] sm:$0xff] }
  0x3d   : > { %389 = vrot.lane.b32.xlu1 %v2061_v4, %s1866_s23  ;;  %v2091_v10 = vld [vmem:[%s2036_s27 + $0x140] sm:$0xff]  ;;  %v2169_v26 = vld [vmem:[%s2036_s27 + $0x108] sm:$0xff]  ;;  %v2248_v43 = vld [vmem:[%s2036_s27 + $0xf0] sm:$0xff]  ;;  %p1788_p8 = pneg %p1787_p4 }
  0x3e   : > { %385 = vrot.lane.b32.xlu0 %v2064_v5, %s1866_s23  ;;  %v2094_v11 = vld [vmem:[%s2036_s27 + $0x120] sm:$0xff]  ;;  %v2178_v27 = vld [vmem:[%s2036_s27 + $0x1a8] sm:$0xff]  ;;  %v2259_v45 = vld [vmem:[%s2036_s27 + $0x190] sm:$0xff] }
  0x3f   : > { %v2103_v12 = vld [vmem:[%s2036_s27 + $0x1c0] sm:$0xff]  ;;  %v2181_v28 = vld [vmem:[%s2036_s27 + $0x188] sm:$0xff]  ;;  %v2262_v46 = vld [vmem:[%s2036_s27 + $0x170] sm:$0xff]  ;;  %p1793_p0 = pnand %p1792_p13, %p1788_p8 }
  0x40   : > { %v2106_v13 = vld [vmem:[%s2036_s27 + $0x1a0] sm:$0xff]  ;;  %v2184_v29 = vld [vmem:[%s2036_s27 + $0x168] sm:$0xff]  ;;  %v2265_v47 = vld [vmem:[%s2036_s27 + $0x150] sm:$0xff] }
  0x41   : > { %v2109_v14 = vld [vmem:[%s2036_s27 + $0x180] sm:$0xff]  ;;  %v2196_v31 = vld [vmem:[%s2036_s27 + $0x1e8] sm:$0xff]  ;;  %v2280_v51 = vld [vmem:[%s2036_s27 + $0x1f0] sm:$0xff] }
  0x42   : > { %v2124_v17 = vld [vmem:[%s2036_s27 + $0x1e0] sm:$0xff]  ;;  %v2199_v32 = vld [vmem:[%s2036_s27 + $0x1c8] sm:$0xff]  ;;  %v2283_v52 = vld [vmem:[%s2036_s27 + $0x1d0] sm:$0xff] }
  0x43   : > { %3551 = vst [vmem:[#allocation25_spill] sm:$0xff] %v2283_v52  ;;  %v2286_v53 = vld [vmem:[%s2036_s27 + $0x1b0] sm:$0xff]  ;;  %v2301_v57 = vld [vmem:[%s2036_s27 + $0x58] sm:$0xff] }
  0x44   : > { %399 = vrot.lane.b32.xlu2 %v2073_v6, %s1866_s23  ;;  %v2304_v58 = vld [vmem:[%s2036_s27 + $0x38] sm:$0xff] }
  0x45   : > { %397 = vrot.lane.b32.xlu1 %v2076_v7, %s1866_s23  ;;  %3555 = vst [vmem:[#allocation29_spill] sm:$0xff] %v2304_v58  ;;  %v2307_v59 = vld [vmem:[%s2036_s27 + $0x18] sm:$0xff] }
  0x46   : > { %395 = vrot.lane.b32.xlu0 %v2079_v8, %s1866_s23  ;;  %v2322_v63 = vld [vmem:[%s2036_s27 + $0xb8] sm:$0xff] }
  0x47   : > { %3559 = vst [vmem:[#allocation33_spill] sm:$0xff] %v2322_v63 }
  0x4c   : > { %405 = vrot.lane.b32.xlu2 %v2088_v9, %s1866_s23 }
  0x4d   : > { %403 = vrot.lane.b32.xlu1 %v2091_v10, %s1866_s23 }
  0x4e   : > { %401 = vrot.lane.b32.xlu0 %v2094_v11, %s1866_s23 }
  0x54   : > { %411 = vrot.lane.b32.xlu2 %v2103_v12, %s1866_s23 }
  0x55   : > { %409 = vrot.lane.b32.xlu1 %v2106_v13, %s1866_s23 }
  0x56   : > { %407 = vrot.lane.b32.xlu0 %v2109_v14, %s1866_s23 }
  0x5c   : > { %417 = vrot.lane.b32.xlu2 %v2118_v15, %s1866_s23 }
  0x5d   : > { %415 = vrot.lane.b32.xlu1 %v2121_v16, %s1866_s23 }
  0x5e   : > { %413 = vrot.lane.b32.xlu0 %v2124_v17, %s1866_s23 }
  0x64   : > { %423 = vrot.lane.b32.xlu2 %v2133_v18, %s1866_s23 }
  0x65   : > { %421 = vrot.lane.b32.xlu1 %v2136_v19, %s1866_s23 }
  0x66   : > { %419 = vrot.lane.b32.xlu0 %v2139_v20, %s1866_s23 }
  0x6c   : > { %429 = vrot.lane.b32.xlu2 %v2148_v21, %s1866_s23 }
  0x6d   : > { %427 = vrot.lane.b32.xlu1 %v2151_v22, %s1866_s23 }
  0x6e   : > { %425 = vrot.lane.b32.xlu0 %v2154_v23, %s1866_s23 }
  0x74   : > { %435 = vrot.lane.b32.xlu2 %v2163_v24, %s1866_s23 }
  0x75   : > { %433 = vrot.lane.b32.xlu1 %v2166_v25, %s1866_s23 }
  0x76   : > { %431 = vrot.lane.b32.xlu0 %v2169_v26, %s1866_s23 }
  0x7c   : > { %441 = vrot.lane.b32.xlu2 %v2178_v27, %s1866_s23 }
  0x7d   : > { %439 = vrot.lane.b32.xlu1 %v2181_v28, %s1866_s23 }
  0x7e   : > { %437 = vrot.lane.b32.xlu0 %v2184_v29, %s1866_s23 }
  0x84   : > { %447 = vrot.lane.b32.xlu2 %v2193_v30, %s1866_s23 }
  0x85   : > { %445 = vrot.lane.b32.xlu1 %v2196_v31, %s1866_s23 }
  0x86   : > { %443 = vrot.lane.b32.xlu0 %v2199_v32, %s1866_s23 }
  0x8c   : > { %453 = vrot.lane.b32.xlu2 %v2208_v33, %s1866_s23 }
  0x8d   : > { %451 = vrot.lane.b32.xlu1 %v2211_v34, %s1866_s23 }
  0x8e   : > { %449 = vrot.lane.b32.xlu0 %v2214_v35, %s1866_s23  ;;  %v2222_v36 = vpop.permute.xlu2 %391 }
  0x8f   : > { %3544 = vst [vmem:[#allocation18_spill] sm:$0xff] %v2222_v36  ;;  %v2364_v36 = vld [vmem:[%s2036_s27 + $0x178] sm:$0xff] }
  0x90   : > { %3567 = vst [vmem:[#allocation41_spill] sm:$0xff] %v2364_v36 }
  0x94   : > { %459 = vrot.lane.b32.xlu2 %v2225_v37, %s1866_s23 }
  0x95   : > { %457 = vrot.lane.b32.xlu1 %v2228_v38, %s1866_s23 }
  0x96   : > { %455 = vrot.lane.b32.xlu0 %v2231_v39, %s1866_s23  ;;  %v2239_v40 = vpop.permute.xlu2 %393 }
  0x97   : > { %3546 = vst [vmem:[#allocation20_spill] sm:$0xff] %v2239_v40 }
  0x9c   : > { %465 = vrot.lane.b32.xlu2 %v2242_v41, %s1866_s23 }
  0x9d   : > { %463 = vrot.lane.b32.xlu1 %v2245_v42, %s1866_s23 }
  0x9e   : > { %461 = vrot.lane.b32.xlu0 %v2248_v43, %s1866_s23  ;;  %v2256_v44 = vpop.permute.xlu2 %399 }
  0x9f   : > { %3547 = vst [vmem:[#allocation21_spill] sm:$0xff] %v2256_v44 }
  0xa4   : > { %471 = vrot.lane.b32.xlu2 %v2259_v45, %s1866_s23 }
  0xa5   : > { %469 = vrot.lane.b32.xlu1 %v2262_v46, %s1866_s23 }
  0xa6   : > { %467 = vrot.lane.b32.xlu0 %v2265_v47, %s1866_s23  ;;  %v2273_v48 = vpop.permute.xlu2 %405 }
  0xa7   : > { %3548 = vst [vmem:[#allocation22_spill] sm:$0xff] %v2273_v48  ;;  %v2275_v49 = vpop.permute.xlu1 %387  ;;  %v2328_v48 = vld [vmem:[%s2036_s27 + $0x78] sm:$0xff] }
  0xa8   : > { %3549 = vst [vmem:[#allocation23_spill] sm:$0xff] %v2275_v49  ;;  %v2277_v50 = vpop.permute.xlu0 %383  ;;  %v2343_v49 = vld [vmem:[%s2036_s27 + $0x118] sm:$0xff] }
  0xa9   : > { %3550 = vst [vmem:[#allocation24_spill] sm:$0xff] %v2277_v50  ;;  %v2349_v50 = vld [vmem:[%s2036_s27 + $0xd8] sm:$0xff] }
  0xaa   : > { %3563 = vst [vmem:[#allocation37_spill] sm:$0xff] %v2343_v49 }
  0xac   : > { %477 = vrot.lane.b32.xlu2 %v2280_v51, %s1866_s23 }
  0xad   : > { %475 = vrot.lane.b32.xlu1 %v2283_v52, %s1866_s23 }
  0xae   : > { %473 = vrot.lane.b32.xlu0 %v2286_v53, %s1866_s23  ;;  %v2294_v54 = vpop.permute.xlu2 %411 }
  0xaf   : > { %3552 = vst [vmem:[#allocation26_spill] sm:$0xff] %v2294_v54  ;;  %v2296_v55 = vpop.permute.xlu1 %389  ;;  %v2325_v54 = vld [vmem:[%s2036_s27 + $0x98] sm:$0xff] }
  0xb0   : > { %3553 = vst [vmem:[#allocation27_spill] sm:$0xff] %v2296_v55  ;;  %v2298_v56 = vpop.permute.xlu0 %385  ;;  %v2346_v55 = vld [vmem:[%s2036_s27 + $0xf8] sm:$0xff] }
  0xb1   : > { %3554 = vst [vmem:[#allocation28_spill] sm:$0xff] %v2298_v56  ;;  %v2367_v56 = vld [vmem:[%s2036_s27 + $0x158] sm:$0xff] }
  0xb2   : > { %3568 = vst [vmem:[#allocation42_spill] sm:$0xff] %v2367_v56 }
  0xb4   : > { %483 = vrot.lane.b32.xlu2 %v2301_v57, %s1866_s23 }
  0xb5   : > { %481 = vrot.lane.b32.xlu1 %v2304_v58, %s1866_s23 }
  0xb6   : > { %479 = vrot.lane.b32.xlu0 %v2307_v59, %s1866_s23  ;;  %v2317_v61 = vpop.permute.xlu2 %417 }
  0xb7   : > { %v2315_v60 = vpop.permute.xlu1 %397  ;;  %3557 = vst [vmem:[#allocation31_spill] sm:$0xff] %v2317_v61  ;;  %v2385_v61 = vld [vmem:[%s2036_s27 + $0x1d8] sm:$0xff] }
  0xb8   : > { %3556 = vst [vmem:[#allocation30_spill] sm:$0xff] %v2315_v60  ;;  %v2319_v62 = vpop.permute.xlu0 %395 }
  0xb9   : > { %3558 = vst [vmem:[#allocation32_spill] sm:$0xff] %v2319_v62 }
  0xba   : > { %3573 = vst [vmem:[#allocation47_spill] sm:$0xff] %v2385_v61 }
  0xbc   : > { %489 = vrot.lane.b32.xlu2 %v2322_v63, %s1866_s23  ;;  %v2391_v63 = vld [vmem:[%s2036_s27 + $0x198] sm:$0xff] }
  0xbd   : > { %487 = vrot.lane.b32.xlu1 %v2325_v54, %s1866_s23  ;;  %3575 = vst [vmem:[#allocation49_spill] sm:$0xff] %v2391_v63 }
  0xbe   : > { %485 = vrot.lane.b32.xlu0 %v2328_v48, %s1866_s23  ;;  %v2338_v40 = vpop.permute.xlu2 %423 }
  0xbf   : > { %v2336_v44 = vpop.permute.xlu1 %403  ;;  %3561 = vst [vmem:[#allocation35_spill] sm:$0xff] %v2338_v40  ;;  %v2370_v40 = vld [vmem:[%s2036_s27 + $0x138] sm:$0xff] }
  0xc0   : > { %3560 = vst [vmem:[#allocation34_spill] sm:$0xff] %v2336_v44  ;;  %v2340_v62 = vpop.permute.xlu0 %401 }
  0xc1   : > { %3562 = vst [vmem:[#allocation36_spill] sm:$0xff] %v2340_v62 }
  0xc2   : > { %3569 = vst [vmem:[#allocation43_spill] sm:$0xff] %v2370_v40 }
  0xc4   : > { %495 = vrot.lane.b32.xlu2 %v2343_v49, %s1866_s23  ;;  %v2388_v49 = vld [vmem:[%s2036_s27 + $0x1b8] sm:$0xff] }
  0xc5   : > { %493 = vrot.lane.b32.xlu1 %v2346_v55, %s1866_s23  ;;  %3574 = vst [vmem:[#allocation48_spill] sm:$0xff] %v2388_v49 }
  0xc6   : > { %491 = vrot.lane.b32.xlu0 %v2349_v50, %s1866_s23  ;;  %v2359_v62 = vpop.permute.xlu2 %429 }
  0xc7   : > { %v2357_v44 = vpop.permute.xlu1 %409  ;;  %3565 = vst [vmem:[#allocation39_spill] sm:$0xff] %v2359_v62 }
  0xc8   : > { %3564 = vst [vmem:[#allocation38_spill] sm:$0xff] %v2357_v44  ;;  %v2361_v60 = vpop.permute.xlu0 %407 }
  0xc9   : > { %3566 = vst [vmem:[#allocation40_spill] sm:$0xff] %v2361_v60 }
  0xcc   : > { %501 = vrot.lane.b32.xlu2 %v2364_v36, %s1866_s23 }
  0xcd   : > { %499 = vrot.lane.b32.xlu1 %v2367_v56, %s1866_s23 }
  0xce   : > { %497 = vrot.lane.b32.xlu0 %v2370_v40, %s1866_s23  ;;  %v2378_v44 = vpop.permute.xlu2 %435  ;;  %v2406_v40 = vld [vmem:[%s2036_s27 + $0x1f8] sm:$0xff] }
  0xcf   : > { %3570 = vst [vmem:[#allocation44_spill] sm:$0xff] %v2378_v44  ;;  %v2380_v62 = vpop.permute.xlu1 %415 }
  0xd0   : > { %3571 = vst [vmem:[#allocation45_spill] sm:$0xff] %v2380_v62  ;;  %v2382_v60 = vpop.permute.xlu0 %413 }
  0xd1   : > { %3572 = vst [vmem:[#allocation46_spill] sm:$0xff] %v2382_v60 }
  0xd2   : > { %3579 = vst [vmem:[#allocation53_spill] sm:$0xff] %v2406_v40 }
  0xd4   : > { %507 = vrot.lane.b32.xlu2 %v2385_v61, %s1866_s23 }
  0xd5   : > { %505 = vrot.lane.b32.xlu1 %v2388_v49, %s1866_s23 }
  0xd6   : > { %503 = vrot.lane.b32.xlu0 %v2391_v63, %s1866_s23  ;;  %v2399_v44 = vpop.permute.xlu2 %441 }
  0xd7   : > { %3576 = vst [vmem:[#allocation50_spill] sm:$0xff] %v2399_v44  ;;  %v2401_v36 = vpop.permute.xlu1 %421 }
  0xd8   : > { %3577 = vst [vmem:[#allocation51_spill] sm:$0xff] %v2401_v36  ;;  %v2403_v60 = vpop.permute.xlu0 %419 }
  0xd9   : > { %3578 = vst [vmem:[#allocation52_spill] sm:$0xff] %v2403_v60 }
  0xdc   : > { %580 = vrot.lane.b32.xlu2 %v2064_v5, %s1867_s25 }
  0xdd   : > { %578 = vrot.lane.b32.xlu1 %v2053_v2, %s1867_s25 }
  0xde   : > { %509 = vrot.lane.b32.xlu0 %v2406_v40, %s1866_s23  ;;  %v2414_v61 = vpop.permute.xlu2 %447 }
  0xdf   : > { %v2416_v63 = vpop.permute.xlu1 %427 }
  0xe0   : > { %3580 = vst [vmem:[#allocation54_spill] sm:$0xff] %v2416_v63  ;;  %v2418_v44 = vpop.permute.xlu0 %425 }
  0xe1   : > { %3581 = vst [vmem:[#allocation55_spill] sm:$0xff] %v2418_v44 }
  0xe4   : > { %586 = vrot.lane.b32.xlu2 %v2043_v0, %s1867_s25 }
  0xe5   : > { %584 = vrot.lane.b32.xlu1 %v2061_v4, %s1867_s25 }
  0xe6   : > { %582 = vrot.lane.b32.xlu0 %v2046_v1, %s1867_s25  ;;  %v2426_v5 = vpop.permute.xlu2 %453 }
  0xe7   : > { %v2428_v2 = vpop.permute.xlu1 %433 }
  0xe8   : > { %3582 = vst [vmem:[#allocation56_spill] sm:$0xff] %v2428_v2  ;;  %v2430_v40 = vpop.permute.xlu0 %431 }
  0xe9   : > { %3583 = vst [vmem:[#allocation57_spill] sm:$0xff] %v2430_v40 }
  0xec   : > { %592 = vrot.lane.b32.xlu2 %v2076_v7, %s1867_s25  ;;  %v511_v7 = vlaneseq }
  0xed   : > { %590 = vrot.lane.b32.xlu1 %v2079_v8, %s1867_s25 }
  0xee   : > { %588 = vrot.lane.b32.xlu0 %v2058_v3, %s1867_s25  ;;  %v2438_v0 = vpop.permute.xlu2 %459  ;;  %v2456_v56 = vand.u32 127, %v511_v7 }
  0xef   : > { %v2440_v4 = vpop.permute.xlu1 %439 }
  0xf0   : > { %3584 = vst [vmem:[#allocation58_spill] sm:$0xff] %v2440_v4  ;;  %v2442_v1 = vpop.permute.xlu0 %437  ;;  %vm513_vm0 = vcmp.lt.s32.totalorder %v2456_v56, 127  ;;  %vm706_vm1 = vcmp.lt.s32.totalorder %v2456_v56, 1 }
  0xf1   : > { %3585 = vst [vmem:[#allocation59_spill] sm:$0xff] %v2442_v1 }
  0xf4   : > { %598 = vrot.lane.b32.xlu2 %v2091_v10, %s1867_s25 }
  0xf5   : > { %596 = vrot.lane.b32.xlu1 %v2094_v11, %s1867_s25 }
  0xf6   : > { %594 = vrot.lane.b32.xlu0 %v2073_v6, %s1867_s25  ;;  %v2450_v8 = vpop.permute.xlu2 %465 }
  0xf7   : > { %3586 = vst [vmem:[#allocation60_spill] sm:$0xff] %v2450_v8  ;;  %v2452_v49 = vpop.permute.xlu1 %445 }
  0xf8   : > { %3587 = vst [vmem:[#allocation61_spill] sm:$0xff] %v2452_v49  ;;  %v2454_v3 = vpop.permute.xlu0 %443 }
  0xf9   : > { %3588 = vst [vmem:[#allocation62_spill] sm:$0xff] %v2454_v3 }
  0xfc   : > { %604 = vrot.lane.b32.xlu2 %v2106_v13, %s1867_s25 }
  0xfd   : > { %602 = vrot.lane.b32.xlu1 %v2109_v14, %s1867_s25 }
  0xfe   : > { %600 = vrot.lane.b32.xlu0 %v2088_v9, %s1867_s25  ;;  %v2465_v6 = vpop.permute.xlu2 %471 }
  0xff   : > { %3589 = vst [vmem:[#allocation63_spill] sm:$0xff] %v2465_v6  ;;  %v452_v10 = vpop.permute.xlu1 %451 }
 0x100   : > { %v2470_v11 = vsel %vm513_vm0, %v2403_v60, %v452_v10  ;;  %v2472_v7 = vpop.permute.xlu0 %449 }
 0x104   : > { %610 = vrot.lane.b32.xlu2 %v2121_v16, %s1867_s25 }
 0x105   : > { %608 = vrot.lane.b32.xlu1 %v2124_v17, %s1867_s25 }
 0x106   : > { %606 = vrot.lane.b32.xlu0 %v2103_v12, %s1867_s25  ;;  %v2480_v9 = vpop.permute.xlu2 %477 }
 0x107   : > { %3590 = vst [vmem:[#allocation64_spill] sm:$0xff] %v2480_v9  ;;  %v458_v13 = vpop.permute.xlu1 %457 }
 0x108   : > { %v2485_v14 = vsel %vm513_vm0, %v2418_v44, %v458_v13  ;;  %v2487_v60 = vpop.permute.xlu0 %455 }
 0x109   : > { %3591 = vst [vmem:[#allocation65_spill] sm:$0xff] %v2485_v14 }
 0x10c   : > { %616 = vrot.lane.b32.xlu2 %v2136_v19, %s1867_s25 }
 0x10d   : > { %614 = vrot.lane.b32.xlu1 %v2139_v20, %s1867_s25 }
 0x10e   : > { %612 = vrot.lane.b32.xlu0 %v2118_v15, %s1867_s25  ;;  %v2495_v12 = vpop.permute.xlu2 %483 }
 0x10f   : > { %3592 = vst [vmem:[#allocation66_spill] sm:$0xff] %v2495_v12  ;;  %v464_v17 = vpop.permute.xlu1 %463  ;;  %v2500_v49 = vsel %vm513_vm0, %v452_v10, %v2495_v12 }
 0x110   : > { %3593 = vst [vmem:[#allocation67_spill] sm:$0xff] %v2500_v49  ;;  %v2505_v44 = vsel %vm513_vm0, %v2430_v40, %v464_v17  ;;  %v2507_v14 = vpop.permute.xlu0 %461 }
 0x111   : > { %3594 = vst [vmem:[#allocation68_spill] sm:$0xff] %v2505_v44 }
 0x114   : > { %622 = vrot.lane.b32.xlu2 %v2151_v22, %s1867_s25 }
 0x115   : > { %620 = vrot.lane.b32.xlu1 %v2154_v23, %s1867_s25 }
 0x116   : > { %618 = vrot.lane.b32.xlu0 %v2133_v18, %s1867_s25  ;;  %v2515_v9 = vpop.permute.xlu2 %489 }
 0x117   : > { %3595 = vst [vmem:[#allocation69_spill] sm:$0xff] %v2515_v9  ;;  %v470_v10 = vpop.permute.xlu1 %469  ;;  %v2520_v12 = vsel %vm513_vm0, %v458_v13, %v2515_v9 }
 0x118   : > { %3596 = vst [vmem:[#allocation70_spill] sm:$0xff] %v2520_v12  ;;  %v2525_v40 = vsel %vm513_vm0, %v2442_v1, %v470_v10  ;;  %v2527_v44 = vpop.permute.xlu0 %467 }
 0x119   : > { %3597 = vst [vmem:[#allocation71_spill] sm:$0xff] %v2525_v40 }
 0x11c   : > { %628 = vrot.lane.b32.xlu2 %v2166_v25, %s1867_s25 }
 0x11d   : > { %626 = vrot.lane.b32.xlu1 %v2169_v26, %s1867_s25 }
 0x11e   : > { %624 = vrot.lane.b32.xlu0 %v2148_v21, %s1867_s25  ;;  %v2535_v49 = vpop.permute.xlu2 %495 }
 0x11f   : > { %3598 = vst [vmem:[#allocation72_spill] sm:$0xff] %v2535_v49  ;;  %v476_v13 = vpop.permute.xlu1 %475  ;;  %v2540_v9 = vsel %vm513_vm0, %v464_v17, %v2535_v49 }
 0x120   : > { %3599 = vst [vmem:[#allocation73_spill] sm:$0xff] %v2540_v9  ;;  %v2545_v1 = vsel %vm513_vm0, %v2454_v3, %v476_v13  ;;  %v2547_v40 = vpop.permute.xlu0 %473 }
 0x121   : > { %3600 = vst [vmem:[#allocation74_spill] sm:$0xff] %v2545_v1 }
 0x124   : > { %634 = vrot.lane.b32.xlu2 %v2181_v28, %s1867_s25 }
 0x125   : > { %632 = vrot.lane.b32.xlu1 %v2184_v29, %s1867_s25 }
 0x126   : > { %630 = vrot.lane.b32.xlu0 %v2163_v24, %s1867_s25  ;;  %v2555_v12 = vpop.permute.xlu2 %501 }
 0x127   : > { %3601 = vst [vmem:[#allocation75_spill] sm:$0xff] %v2555_v12  ;;  %v2557_v17 = vpop.permute.xlu1 %481  ;;  %v2562_v3 = vsel %vm513_vm0, %v470_v10, %v2555_v12 }
 0x128   : > { %3602 = vst [vmem:[#allocation76_spill] sm:$0xff] %v2557_v17  ;;  %v2568_v49 = vsel %vm513_vm0, %v2472_v7, %v2557_v17  ;;  %v2570_v1 = vpop.permute.xlu0 %479 }
 0x129   : > { %3603 = vst [vmem:[#allocation77_spill] sm:$0xff] %v2562_v3 }
 0x12a   : > { %3604 = vst [vmem:[#allocation78_spill] sm:$0xff] %v2568_v49 }
 0x12c   : > { %640 = vrot.lane.b32.xlu2 %v2196_v31, %s1867_s25 }
 0x12d   : > { %638 = vrot.lane.b32.xlu1 %v2199_v32, %s1867_s25 }
 0x12e   : > { %636 = vrot.lane.b32.xlu0 %v2178_v27, %s1867_s25  ;;  %v2578_v9 = vpop.permute.xlu2 %507 }
 0x12f   : > { %3605 = vst [vmem:[#allocation79_spill] sm:$0xff] %v2578_v9  ;;  %v2580_v10 = vpop.permute.xlu1 %487  ;;  %v2585_v12 = vsel %vm513_vm0, %v476_v13, %v2578_v9 }
 0x130   : > { %3606 = vst [vmem:[#allocation80_spill] sm:$0xff] %v2580_v10  ;;  %v2591_v17 = vsel %vm513_vm0, %v2487_v60, %v2580_v10  ;;  %v2593_v49 = vpop.permute.xlu0 %485 }
 0x131   : > { %3607 = vst [vmem:[#allocation81_spill] sm:$0xff] %v2585_v12 }
 0x132   : > { %3608 = vst [vmem:[#allocation82_spill] sm:$0xff] %v2591_v17 }
 0x133   : > { %3609 = vst [vmem:[#allocation83_spill] sm:$0xff] %v2593_v49 }
 0x134   : > { %646 = vrot.lane.b32.xlu2 %v2211_v34, %s1867_s25 }
 0x135   : > { %644 = vrot.lane.b32.xlu1 %v2214_v35, %s1867_s25 }
 0x136   : > { %642 = vrot.lane.b32.xlu0 %v2193_v30, %s1867_s25  ;;  %v2601_v3 = vpop.permute.xlu2 %580 }
 0x137   : > { %v2603_v13 = vpop.permute.xlu1 %493 }
 0x138   : > { %3610 = vst [vmem:[#allocation84_spill] sm:$0xff] %v2603_v13  ;;  %v2609_v9 = vsel %vm513_vm0, %v2507_v14, %v2603_v13  ;;  %v2611_v10 = vpop.permute.xlu0 %491 }
 0x139   : > { %3611 = vst [vmem:[#allocation85_spill] sm:$0xff] %v2609_v9 }
 0x13a   : > { %3612 = vst [vmem:[#allocation86_spill] sm:$0xff] %v2611_v10 }
 0x13c   : > { %652 = vrot.lane.b32.xlu2 %v2228_v38, %s1867_s25 }
 0x13d   : > { %650 = vrot.lane.b32.xlu1 %v2231_v39, %s1867_s25 }
 0x13e   : > { %648 = vrot.lane.b32.xlu0 %v2208_v33, %s1867_s25  ;;  %v2619_v17 = vpop.permute.xlu2 %586 }
 0x13f   : > { %v2621_v12 = vpop.permute.xlu1 %499 }
 0x140   : > { %3613 = vst [vmem:[#allocation87_spill] sm:$0xff] %v2621_v12  ;;  %v2627_v13 = vsel %vm513_vm0, %v2527_v44, %v2621_v12  ;;  %v2629_v9 = vpop.permute.xlu0 %497 }
 0x141   : > { %3614 = vst [vmem:[#allocation88_spill] sm:$0xff] %v2627_v13 }
 0x142   : > { %3615 = vst [vmem:[#allocation89_spill] sm:$0xff] %v2629_v9 }
 0x144   : > { %658 = vrot.lane.b32.xlu2 %v2245_v42, %s1867_s25 }
 0x145   : > { %656 = vrot.lane.b32.xlu1 %v2248_v43, %s1867_s25 }
 0x146   : > { %654 = vrot.lane.b32.xlu0 %v2225_v37, %s1867_s25  ;;  %v2637_v10 = vpop.permute.xlu2 %592 }
 0x147   : > { %v2639_v33 = vpop.permute.xlu1 %505 }
 0x148   : > { %3616 = vst [vmem:[#allocation90_spill] sm:$0xff] %v2639_v33  ;;  %v2645_v12 = vsel %vm513_vm0, %v2547_v40, %v2639_v33  ;;  %v2647_v13 = vpop.permute.xlu0 %503 }
 0x149   : > { %3617 = vst [vmem:[#allocation91_spill] sm:$0xff] %v2645_v12  ;;  %v772_v12 = vld [vmem:[#allocation2 + $0x8] sm:$0xff] }
 0x14a   : > { %3618 = vst [vmem:[#allocation92_spill] sm:$0xff] %v2647_v13  ;;  %v836_v13 = vld [vmem:[#allocation5 + $0x8] sm:$0xff]  ;;  %v964_v39 = vmul.f32 %v772_v12, %v2121_v16 }
 0x14c   : > { %664 = vrot.lane.b32.xlu2 %v2262_v46, %s1867_s25 }
 0x14d   : > { %662 = vrot.lane.b32.xlu1 %v2265_v47, %s1867_s25 }
 0x14e   : > { %660 = vrot.lane.b32.xlu0 %v2242_v41, %s1867_s25  ;;  %v2655_v37 = vpop.permute.xlu2 %598 }
 0x14f   : > { %v2657_v43 = vpop.permute.xlu1 %578 }
 0x150   : > { %3619 = vst [vmem:[#allocation93_spill] sm:$0xff] %v2657_v43  ;;  %v2659_v9 = vpop.permute.xlu0 %509 }
 0x151   : > { %3620 = vst [vmem:[#allocation94_spill] sm:$0xff] %v2659_v9  ;;  %v530_v9 = vsel %vm513_vm0, %v2380_v62, %v2414_v61  ;;  %v848_v62 = vld [vmem:[#allocation5 + $0x68] sm:$0xff] }
 0x154   : > { %670 = vrot.lane.b32.xlu2 %v2283_v52, %s1867_s25  ;;  %v1028_v52 = vmul.f32 %v836_v13, %v530_v9  ;;  %v784_v13 = vld [vmem:[#allocation2 + $0x68] sm:$0xff] }
 0x155   : > { %668 = vrot.lane.b32.xlu1 %v2286_v53, %s1867_s25  ;;  %v976_v30 = vmul.f32 %v784_v13, %v2136_v19 }
 0x156   : > { %666 = vrot.lane.b32.xlu0 %v2259_v45, %s1867_s25  ;;  %v2667_v33 = vpop.permute.xlu2 %604  ;;  %v900_v45 = vld [vmem:[#allocation7 + $0x8] sm:$0xff]  ;;  %v1092_v12 = vadd.f32 %v1028_v52, %v964_v39 }
 0x157   : > { %v2669_v47 = vpop.permute.xlu1 %584  ;;  %v912_v39 = vld [vmem:[#allocation7 + $0x68] sm:$0xff] }
 0x158   : > { %3621 = vst [vmem:[#allocation95_spill] sm:$0xff] %v2669_v47  ;;  %v2671_v41 = vpop.permute.xlu0 %582 }
 0x159   : > { %3622 = vst [vmem:[#allocation96_spill] sm:$0xff] %v2671_v41 }
 0x15c   : > { %676 = vrot.lane.b32.xlu2 %v2304_v58, %s1867_s25 }
 0x15d   : > { %674 = vrot.lane.b32.xlu1 %v2307_v59, %s1867_s25 }
 0x15e   : > { %672 = vrot.lane.b32.xlu0 %v2280_v51, %s1867_s25  ;;  %v2685_v53 = vpop.permute.xlu2 %610  ;;  %v533_v51 = vsel %vm513_vm0, %v2401_v36, %v2426_v5 }
 0x15f   : > { %v2687_v49 = vpop.permute.xlu1 %590  ;;  %v739_v16 = vsel %vm706_vm1, %v2657_v43, %v2685_v53  ;;  %v1040_v35 = vmul.f32 %v848_v62, %v533_v51  ;;  %v3637_v43 = vld [vmem:[#allocation31_spill] sm:$0xff] }
 0x160   : > { %3623 = vst [vmem:[#allocation97_spill] sm:$0xff] %v2687_v49  ;;  %v2693_v9 = vpop.permute.xlu0 %588  ;;  %v1156_v59 = vmul.f32 %v900_v45, %v739_v16 }
 0x161   : > { %3624 = vst [vmem:[#allocation98_spill] sm:$0xff] %v2693_v9  ;;  %v1104_v45 = vadd.f32 %v1040_v35, %v976_v30  ;;  %v3627_v30 = vld [vmem:[#allocation33_spill] sm:$0xff]  ;;  %v924_v35 = vld [vmem:[#allocation7 + $0xc8] sm:$0xff] }
 0x162   : > { %v1220_v58 = vadd.f32 %v1156_v59, %v1092_v12  ;;  %v796_v12 = vld [vmem:[#allocation2 + $0xc8] sm:$0xff] }
 0x163   : > { %v860_v59 = vld [vmem:[#allocation5 + $0xc8] sm:$0xff]  ;;  %v988_v13 = vmul.f32 %v796_v12, %v2151_v22 }
 0x164   : > { %1284 = vst [vmem:[%s2702_s11 + $0x8] sm:$0xff] %v1220_v58  ;;  %682 = vrot.lane.b32.xlu2 %v2325_v54, %s1867_s25  ;;  %v808_v12 = vld [vmem:[#allocation2 + $0x128] sm:$0xff] }
 0x165   : > { %680 = vrot.lane.b32.xlu1 %v2328_v48, %s1867_s25  ;;  %v536_v48 = vsel %vm513_vm0, %v2416_v63, %v2438_v0 }
 0x166   : > { %678 = vrot.lane.b32.xlu0 %v2301_v57, %s1867_s25  ;;  %v2711_v52 = vpop.permute.xlu2 %616  ;;  %v1052_v51 = vmul.f32 %v860_v59, %v536_v48  ;;  %v872_v59 = vld [vmem:[#allocation5 + $0x128] sm:$0xff] }
 0x167   : > { %v2713_v19 = vpop.permute.xlu1 %596  ;;  %v742_v58 = vsel %vm706_vm1, %v2669_v47, %v2711_v52  ;;  %v3631_v47 = vld [vmem:[#allocation42_spill] sm:$0xff] }
 0x168   : > { %3625 = vst [vmem:[#allocation99_spill] sm:$0xff] %v2713_v19  ;;  %v2719_v62 = vpop.permute.xlu0 %594  ;;  %v1168_v16 = vmul.f32 %v912_v39, %v742_v58 }
 0x169   : > { %3626 = vst [vmem:[#allocation100_spill] sm:$0xff] %v2719_v62 }
 0x16a   : > { %v1232_v57 = vadd.f32 %v1168_v16, %v1104_v45 }
 0x16c   : > { %1296 = vst [vmem:[%s2702_s11 + $0x68] sm:$0xff] %v1232_v57  ;;  %688 = vrot.lane.b32.xlu2 %v2346_v55, %s1867_s25  ;;  %v1116_v55 = vadd.f32 %v1052_v51, %v988_v13  ;;  %v1000_v57 = vmul.f32 %v808_v12, %v2166_v25  ;;  %v3633_v13 = vld [vmem:[#allocation37_spill] sm:$0xff]  ;;  %v936_v51 = vld [vmem:[#allocation7 + $0x128] sm:$0xff]  ;;  %v542_v12 = vsel %vm513_vm0, %v2440_v4, %v2465_v6 }
 0x16d   : > { %686 = vrot.lane.b32.xlu1 %v2349_v50, %s1867_s25  ;;  %v539_v50 = vsel %vm513_vm0, %v2428_v2, %v2450_v8  ;;  %v780_v2 = vld [vmem:[#allocation2 + $0x48] sm:$0xff] }
 0x16e   : > { %684 = vrot.lane.b32.xlu0 %v3627_v30, %s1867_s25  ;;  %v2733_v39 = vpop.permute.xlu2 %622  ;;  %v1064_v30 = vmul.f32 %v872_v59, %v539_v50  ;;  %v844_v59 = vld [vmem:[#allocation5 + $0x48] sm:$0xff]  ;;  %v972_v36 = vmul.f32 %v780_v2, %v2139_v20 }
 0x16f   : > { %3628 = vst [vmem:[#allocation33_spill] sm:$0xff] %v2733_v39  ;;  %v2735_v58 = vpop.permute.xlu1 %602  ;;  %v745_v22 = vsel %vm706_vm1, %v2687_v49, %v2733_v39  ;;  %v3632_v49 = vld [vmem:[#allocation43_spill] sm:$0xff]  ;;  %v3638_v4 = vld [vmem:[#allocation48_spill] sm:$0xff] }
 0x170   : > { %3629 = vst [vmem:[#allocation101_spill] sm:$0xff] %v2735_v58  ;;  %v2741_v45 = vpop.permute.xlu0 %600  ;;  %v1180_v16 = vmul.f32 %v924_v35, %v745_v22  ;;  %v908_v20 = vld [vmem:[#allocation7 + $0x48] sm:$0xff] }
 0x171   : > { %3630 = vst [vmem:[#allocation102_spill] sm:$0xff] %v2741_v45 }
 0x172   : > { %v1244_v48 = vadd.f32 %v1180_v16, %v1116_v55  ;;  %v1128_v16 = vadd.f32 %v1064_v30, %v1000_v57 }
 0x174   : > { %1308 = vst [vmem:[%s2702_s11 + $0xc8] sm:$0xff] %v1244_v48  ;;  %694 = vrot.lane.b32.xlu2 %v3631_v47, %s1867_s25  ;;  %v820_v47 = vld [vmem:[#allocation2 + $0x188] sm:$0xff] }
 0x175   : > { %692 = vrot.lane.b32.xlu1 %v3632_v49, %s1867_s25  ;;  %v884_v49 = vld [vmem:[#allocation5 + $0x188] sm:$0xff]  ;;  %v1012_v57 = vmul.f32 %v820_v47, %v2181_v28 }
 0x176   : > { %690 = vrot.lane.b32.xlu0 %v3633_v13, %s1867_s25  ;;  %v2755_v35 = vpop.permute.xlu2 %628  ;;  %v776_v48 = vld [vmem:[#allocation2 + $0x28] sm:$0xff]  ;;  %v1076_v30 = vmul.f32 %v884_v49, %v542_v12 }
 0x177   : > { %3634 = vst [vmem:[#allocation42_spill] sm:$0xff] %v2755_v35  ;;  %v2757_v22 = vpop.permute.xlu1 %608  ;;  %v748_v25 = vsel %vm706_vm1, %v2713_v19, %v2755_v35  ;;  %v840_v13 = vld [vmem:[#allocation5 + $0x28] sm:$0xff]  ;;  %v531_v19 = vsel %vm513_vm0, %v3637_v43, %v2472_v7  ;;  %v1036_v35 = vmul.f32 %v844_v59, %v2470_v11  ;;  %v3640_v7 = vld [vmem:[#allocation41_spill] sm:$0xff] }
 0x178   : > { %3635 = vst [vmem:[#allocation43_spill] sm:$0xff] %v2757_v22  ;;  %v2763_v55 = vpop.permute.xlu0 %606  ;;  %v1192_v50 = vmul.f32 %v936_v51, %v748_v25  ;;  %v3639_v51 = vld [vmem:[#allocation49_spill] sm:$0xff]  ;;  %v968_v25 = vmul.f32 %v776_v48, %v2118_v15  ;;  %v1032_v6 = vmul.f32 %v840_v13, %v531_v19  ;;  %v904_v11 = vld [vmem:[#allocation7 + $0x28] sm:$0xff] }
 0x179   : > { %3636 = vst [vmem:[#allocation37_spill] sm:$0xff] %v2763_v55  ;;  %v1100_v47 = vadd.f32 %v1036_v35, %v972_v36  ;;  %v832_v49 = vld [vmem:[#allocation2 + $0x1e8] sm:$0xff] }
 0x17a   : > { %v1256_v63 = vadd.f32 %v1192_v50, %v1128_v16  ;;  %v948_v16 = vld [vmem:[#allocation7 + $0x188] sm:$0xff]  ;;  %v3643_v50 = vld [vmem:[#allocation61_spill] sm:$0xff] }
 0x17b   : > { %v896_v12 = vld [vmem:[#allocation5 + $0x1e8] sm:$0xff] }
 0x17c   : > { %1320 = vst [vmem:[%s2702_s11 + $0x128] sm:$0xff] %v1256_v63  ;;  %700 = vrot.lane.b32.xlu2 %v3638_v4, %s1867_s25  ;;  %v1140_v63 = vadd.f32 %v1076_v30, %v1012_v57  ;;  %v3642_v59 = vld [vmem:[#allocation64_spill] sm:$0xff]  ;;  %v1096_v30 = vadd.f32 %v1032_v6, %v968_v25  ;;  %v3645_v6 = vld [vmem:[#allocation65_spill] sm:$0xff] }
 0x17d   : > { %698 = vrot.lane.b32.xlu1 %v3639_v51, %s1867_s25  ;;  %v545_v48 = vsel %vm513_vm0, %v3643_v50, %v3642_v59  ;;  %v792_v57 = vld [vmem:[#allocation2 + $0xa8] sm:$0xff] }
 0x17e   : > { %696 = vrot.lane.b32.xlu0 %v3640_v7, %s1867_s25  ;;  %v2784_v2 = vpop.permute.xlu2 %634  ;;  %v856_v51 = vld [vmem:[#allocation5 + $0xa8] sm:$0xff]  ;;  %v984_v8 = vmul.f32 %v792_v57, %v2154_v23 }
 0x17f   : > { %3641 = vst [vmem:[#allocation31_spill] sm:$0xff] %v2784_v2  ;;  %v2786_v28 = vpop.permute.xlu1 %614  ;;  %v751_v4 = vsel %vm706_vm1, %v2735_v58, %v2784_v2  ;;  %v788_v58 = vld [vmem:[#allocation2 + $0x88] sm:$0xff]  ;;  %v3644_v2 = vld [vmem:[#allocation35_spill] sm:$0xff]  ;;  %v1048_v25 = vmul.f32 %v856_v51, %v3645_v6 }
 0x180   : > { %v741_v15 = vsel %vm706_vm1, %v2671_v41, %v2786_v28  ;;  %v2796_v19 = vpop.permute.xlu0 %612  ;;  %v1204_v36 = vmul.f32 %v948_v16, %v751_v4  ;;  %v852_v41 = vld [vmem:[#allocation5 + $0x88] sm:$0xff]  ;;  %v534_v50 = vsel %vm513_vm0, %v3644_v2, %v2487_v60  ;;  %v1024_v4 = vmul.f32 %v832_v49, %v2196_v31  ;;  %v3647_v60 = vld [vmem:[#allocation47_spill] sm:$0xff] }
 0x181   : > { %v1164_v35 = vmul.f32 %v908_v20, %v741_v15  ;;  %v740_v13 = vsel %vm706_vm1, %v2601_v3, %v2796_v19  ;;  %v1088_v15 = vmul.f32 %v896_v12, %v545_v48  ;;  %v1044_v39 = vmul.f32 %v852_v41, %v534_v50  ;;  %v916_v23 = vld [vmem:[#allocation7 + $0x88] sm:$0xff]  ;;  %v845_v50 = vld [vmem:[#allocation5 + $0x50] sm:$0xff] }
 0x182   : > { %v1160_v7 = vmul.f32 %v904_v11, %v740_v13  ;;  %v1268_v16 = vadd.f32 %v1204_v36, %v1140_v63  ;;  %v3646_v11 = vld [vmem:[#allocation53_spill] sm:$0xff]  ;;  %v980_v13 = vmul.f32 %v788_v58, %v2133_v18  ;;  %v960_v63 = vld [vmem:[#allocation7 + $0x1e8] sm:$0xff] }
 0x183   : > { %v1228_v20 = vadd.f32 %v1164_v35, %v1100_v47  ;;  %v920_v47 = vld [vmem:[#allocation7 + $0xa8] sm:$0xff]  ;;  %v1152_v12 = vadd.f32 %v1088_v15, %v1024_v4  ;;  %v781_v58 = vld [vmem:[#allocation2 + $0x50] sm:$0xff]  ;;  %v3648_v15 = vld [vmem:[#allocation39_spill] sm:$0xff] }
 0x184   : > { %v1224_v59 = vadd.f32 %v1160_v7, %v1096_v30  ;;  %1332 = vst [vmem:[%s2702_s11 + $0x188] sm:$0xff] %v1268_v16  ;;  %v804_v30 = vld [vmem:[#allocation2 + $0x108] sm:$0xff]  ;;  %v1108_v51 = vadd.f32 %v1044_v39, %v980_v13 }
 0x185   : > { %704 = vrot.lane.b32.xlu1 %v3646_v11, %s1867_s25  ;;  %1292 = vst [vmem:[%s2702_s11 + $0x48] sm:$0xff] %v1228_v20  ;;  %v868_v7 = vld [vmem:[#allocation5 + $0x108] sm:$0xff]  ;;  %v973_v11 = vmul.f32 %v781_v58, %v2211_v34  ;;  %v996_v39 = vmul.f32 %v804_v30, %v2169_v26 }
 0x186   : > { %702 = vrot.lane.b32.xlu0 %v3647_v60, %s1867_s25  ;;  %1288 = vst [vmem:[%s2702_s11 + $0x28] sm:$0xff] %v1224_v59  ;;  %v2821_v31 = vpop.permute.xlu2 %640  ;;  %v1112_v59 = vadd.f32 %v1048_v25, %v984_v8  ;;  %v800_v20 = vld [vmem:[#allocation2 + $0xe8] sm:$0xff]  ;;  %v537_v8 = vsel %vm513_vm0, %v3648_v15, %v2507_v14  ;;  %v3649_v60 = vld [vmem:[#allocation67_spill] sm:$0xff] }
 0x187   : > { %v2823_v49 = vpop.permute.xlu1 %620  ;;  %v754_v48 = vsel %vm706_vm1, %v2757_v22, %v2821_v31  ;;  %v864_v4 = vld [vmem:[#allocation5 + $0xe8] sm:$0xff] }
 0x188   : > { %v744_v18 = vsel %vm706_vm1, %v2693_v9, %v2823_v49  ;;  %v2833_v41 = vpop.permute.xlu0 %618  ;;  %v1216_v36 = vmul.f32 %v960_v63, %v754_v48  ;;  %v1037_v63 = vmul.f32 %v845_v50, %v3649_v60  ;;  %v3650_v13 = vld [vmem:[#allocation68_spill] sm:$0xff]  ;;  %v793_v50 = vld [vmem:[#allocation2 + $0xb0] sm:$0xff]  ;;  %v1627_v9 = vld [vmem:[%s2036_s27 + $0x1a0] sm:$0xff] }
 0x189   : > { %v1176_v35 = vmul.f32 %v920_v47, %v744_v18  ;;  %v743_v57 = vsel %vm706_vm1, %v2619_v17, %v2833_v41  ;;  %v1060_v48 = vmul.f32 %v868_v7, %v3650_v13  ;;  %v1056_v18 = vmul.f32 %v864_v4, %v537_v8  ;;  %v932_v22 = vld [vmem:[#allocation7 + $0x108] sm:$0xff] }
 0x18a   : > { %v1172_v16 = vmul.f32 %v916_v23, %v743_v57  ;;  %v1280_v6 = vadd.f32 %v1216_v36, %v1152_v12  ;;  %v992_v23 = vmul.f32 %v800_v20, %v2148_v21  ;;  %v909_v57 = vld [vmem:[#allocation7 + $0x50] sm:$0xff]  ;;  %v928_v34 = vld [vmem:[#allocation7 + $0xe8] sm:$0xff]  ;;  %v1101_v58 = vadd.f32 %v1037_v63, %v973_v11 }
 0x18b   : > { %v1240_v25 = vadd.f32 %v1176_v35, %v1112_v59  ;;  %v1124_v36 = vadd.f32 %v1060_v48, %v996_v39  ;;  %v857_v35 = vld [vmem:[#allocation5 + $0xb0] sm:$0xff]  ;;  %v880_v20 = vld [vmem:[#allocation5 + $0x168] sm:$0xff]  ;;  %v985_v63 = vmul.f32 %v793_v50, %v2228_v38 }
 0x18c   : > { %v1236_v47 = vadd.f32 %v1172_v16, %v1108_v51  ;;  %1344 = vst [vmem:[%s2702_s11 + $0x1e8] sm:$0xff] %v1280_v6  ;;  %v816_v16 = vld [vmem:[#allocation2 + $0x168] sm:$0xff] }
 0x18d   : > { %1304 = vst [vmem:[%s2702_s11 + $0xa8] sm:$0xff] %v1240_v25  ;;  %v812_v8 = vld [vmem:[#allocation2 + $0x148] sm:$0xff]  ;;  %v1008_v48 = vmul.f32 %v816_v16, %v2184_v29 }
 0x18e   : > { %1300 = vst [vmem:[%s2702_s11 + $0x88] sm:$0xff] %v1236_v47  ;;  %v2851_v14 = vpop.permute.xlu2 %646  ;;  %v876_v6 = vld [vmem:[#allocation5 + $0x148] sm:$0xff]  ;;  %v3652_v47 = vld [vmem:[#allocation70_spill] sm:$0xff] }
 0x18f   : > { %v2853_v12 = vpop.permute.xlu1 %626  ;;  %v725_v26 = vsel %vm706_vm1, %v2786_v28, %v2851_v14  ;;  %v1120_v28 = vadd.f32 %v1056_v18, %v992_v23  ;;  %v3651_v25 = vld [vmem:[#allocation44_spill] sm:$0xff]  ;;  %v1049_v39 = vmul.f32 %v857_v35, %v3652_v47  ;;  %v3653_v23 = vld [vmem:[#allocation71_spill] sm:$0xff]  ;;  %v805_v35 = vld [vmem:[#allocation2 + $0x110] sm:$0xff] }
 0x190   : > { %v747_v21 = vsel %vm706_vm1, %v2719_v62, %v2853_v12  ;;  %v2863_v59 = vpop.permute.xlu0 %624  ;;  %v1165_v30 = vmul.f32 %v909_v57, %v725_v26  ;;  %v540_v11 = vsel %vm513_vm0, %v3651_v25, %v2527_v44  ;;  %v1072_v18 = vmul.f32 %v880_v20, %v3653_v23  ;;  %v921_v26 = vld [vmem:[#allocation7 + $0xb0] sm:$0xff]  ;;  %v940_v38 = vld [vmem:[#allocation7 + $0x148] sm:$0xff] }
 0x191   : > { %v1188_v51 = vmul.f32 %v932_v22, %v747_v21  ;;  %v746_v7 = vsel %vm706_vm1, %v2637_v10, %v2863_v59  ;;  %v1004_v57 = vmul.f32 %v812_v8, %v2163_v24  ;;  %v944_v21 = vld [vmem:[#allocation7 + $0x168] sm:$0xff]  ;;  %v1113_v50 = vadd.f32 %v1049_v39, %v985_v63 }
 0x192   : > { %v1184_v4 = vmul.f32 %v928_v34, %v746_v7  ;;  %v1229_v22 = vadd.f32 %v1165_v30, %v1101_v58  ;;  %v1068_v34 = vmul.f32 %v876_v6, %v540_v11  ;;  %v1136_v30 = vadd.f32 %v1072_v18, %v1008_v48  ;;  %v828_v20 = vld [vmem:[#allocation2 + $0x1c8] sm:$0xff] }
 0x193   : > { %v1252_v60 = vadd.f32 %v1188_v51, %v1124_v36  ;;  %v869_v51 = vld [vmem:[#allocation5 + $0x110] sm:$0xff]  ;;  %v824_v6 = vld [vmem:[#allocation2 + $0x1a8] sm:$0xff]  ;;  %v997_v39 = vmul.f32 %v805_v35, %v2245_v42  ;;  %v1020_v18 = vmul.f32 %v828_v20, %v2199_v32 }
 0x194   : > { %v1248_v13 = vadd.f32 %v1184_v4, %v1120_v28  ;;  %1293 = vst [vmem:[%s2702_s11 + $0x50] sm:$0xff] %v1229_v22  ;;  %v892_v4 = vld [vmem:[#allocation5 + $0x1c8] sm:$0xff]  ;;  %v3655_v22 = vld [vmem:[#allocation50_spill] sm:$0xff] }
 0x195   : > { %1316 = vst [vmem:[%s2702_s11 + $0x108] sm:$0xff] %v1252_v60  ;;  %v888_v11 = vld [vmem:[#allocation5 + $0x1a8] sm:$0xff]  ;;  %v543_v60 = vsel %vm513_vm0, %v3655_v22, %v2547_v40 }
 0x196   : > { %1312 = vst [vmem:[%s2702_s11 + $0xe8] sm:$0xff] %v1248_v13  ;;  %v2881_v44 = vpop.permute.xlu2 %652  ;;  %v3656_v13 = vld [vmem:[#allocation73_spill] sm:$0xff]  ;;  %v952_v42 = vld [vmem:[#allocation7 + $0x1a8] sm:$0xff] }
 0x197   : > { %3654 = vst [vmem:[#allocation48_spill] sm:$0xff] %v2881_v44  ;;  %v2883_v58 = vpop.permute.xlu1 %632  ;;  %v728_v29 = vsel %vm706_vm1, %v2823_v49, %v2881_v44  ;;  %v1132_v49 = vadd.f32 %v1068_v34, %v1004_v57  ;;  %v1061_v48 = vmul.f32 %v869_v51, %v3656_v13  ;;  %v3657_v57 = vld [vmem:[#allocation74_spill] sm:$0xff]  ;;  %v3659_v13 = vld [vmem:[#allocation77_spill] sm:$0xff] }
 0x198   : > { %v750_v24 = vsel %vm706_vm1, %v2741_v45, %v2883_v58  ;;  %v2893_v36 = vpop.permute.xlu0 %630  ;;  %v1177_v7 = vmul.f32 %v921_v26, %v728_v29  ;;  %v1084_v34 = vmul.f32 %v892_v4, %v3657_v57  ;;  %v1016_v26 = vmul.f32 %v824_v6, %v2178_v27  ;;  %v956_v29 = vld [vmem:[#allocation7 + $0x1c8] sm:$0xff]  ;;  %v841_v4 = vld [vmem:[#allocation5 + $0x30] sm:$0xff] }
 0x199   : > { %v1200_v16 = vmul.f32 %v944_v21, %v750_v24  ;;  %v749_v28 = vsel %vm706_vm1, %v2655_v37, %v2893_v36  ;;  %v1080_v21 = vmul.f32 %v888_v11, %v543_v60  ;;  %v1125_v24 = vadd.f32 %v1061_v48, %v997_v39  ;;  %v773_v6 = vld [vmem:[#allocation2 + $0x10] sm:$0xff] }
 0x19a   : > { %v1196_v8 = vmul.f32 %v940_v38, %v749_v28  ;;  %v1241_v63 = vadd.f32 %v1177_v7, %v1113_v50  ;;  %v933_v38 = vld [vmem:[#allocation7 + $0x110] sm:$0xff]  ;;  %v1148_v51 = vadd.f32 %v1084_v34, %v1020_v18  ;;  %v514_v60 = vsel %vm513_vm0, %v2414_v61, %v2570_v1  ;;  %v3661_v34 = vld [vmem:[#allocation78_spill] sm:$0xff] }
 0x19b   : > { %v1264_v47 = vadd.f32 %v1200_v16, %v1136_v30  ;;  %v817_v30 = vld [vmem:[#allocation2 + $0x170] sm:$0xff] }
 0x19c   : > { %v1260_v23 = vadd.f32 %v1196_v8, %v1132_v49  ;;  %1305 = vst [vmem:[%s2702_s11 + $0xb0] sm:$0xff] %v1241_v63  ;;  %v881_v7 = vld [vmem:[#allocation5 + $0x170] sm:$0xff]  ;;  %v1009_v39 = vmul.f32 %v817_v30, %v2262_v46 }
 0x19d   : > { %1328 = vst [vmem:[%s2702_s11 + $0x168] sm:$0xff] %v1264_v47  ;;  %v777_v49 = vld [vmem:[#allocation2 + $0x30] sm:$0xff]  ;;  %v1073_v48 = vmul.f32 %v881_v7, %v3659_v13 }
 0x19e   : > { %1324 = vst [vmem:[%s2702_s11 + $0x148] sm:$0xff] %v1260_v23  ;;  %v2911_v40 = vpop.permute.xlu2 %658  ;;  %v837_v11 = vld [vmem:[#allocation5 + $0x10] sm:$0xff] }
 0x19f   : > { %3658 = vst [vmem:[#allocation49_spill] sm:$0xff] %v2911_v40  ;;  %v2913_v50 = vpop.permute.xlu1 %638  ;;  %v731_v32 = vsel %vm706_vm1, %v2853_v12, %v2911_v40  ;;  %v1144_v12 = vadd.f32 %v1080_v21, %v1016_v26  ;;  %v3660_v18 = vld [vmem:[#allocation17_spill] sm:$0xff]  ;;  %v1033_v26 = vmul.f32 %v841_v4, %v3661_v34  ;;  %v3662_v21 = vld [vmem:[#allocation15_spill] sm:$0xff] }
 0x1a0   : > { %v753_v27 = vsel %vm706_vm1, %v2763_v55, %v2913_v50  ;;  %v2923_v35 = vpop.permute.xlu0 %636  ;;  %v1189_v16 = vmul.f32 %v933_v38, %v731_v32  ;;  %v969_v57 = vmul.f32 %v777_v49, %v3660_v18  ;;  %v965_v38 = vmul.f32 %v773_v6, %v3662_v21  ;;  %v905_v32 = vld [vmem:[#allocation7 + $0x30] sm:$0xff]  ;;  %v1626_v40 = vld [vmem:[%s2036_s27 + $0x140] sm:$0xff] }
 0x1a1   : > { %v1212_v28 = vmul.f32 %v956_v29, %v753_v27  ;;  %v752_v20 = vsel %vm706_vm1, %v2667_v33, %v2923_v35  ;;  %v1029_v29 = vmul.f32 %v837_v11, %v514_v60  ;;  %v901_v46 = vld [vmem:[#allocation7 + $0x10] sm:$0xff]  ;;  %v1137_v27 = vadd.f32 %v1073_v48, %v1009_v39  ;;  %v775_v48 = vld [vmem:[#allocation2 + $0x20] sm:$0xff] }
 0x1a2   : > { %v1208_v8 = vmul.f32 %v952_v42, %v752_v20  ;;  %v1253_v63 = vadd.f32 %v1189_v16, %v1125_v24  ;;  %v945_v42 = vld [vmem:[#allocation7 + $0x170] sm:$0xff] }
 0x1a3   : > { %v1276_v47 = vadd.f32 %v1212_v28, %v1148_v51  ;;  %v829_v16 = vld [vmem:[#allocation2 + $0x1d0] sm:$0xff]  ;;  %v1097_v28 = vadd.f32 %v1033_v26, %v969_v57  ;;  %v3667_v26 = vld [vmem:[#allocation19_spill] sm:$0xff] }
 0x1a4   : > { %v1272_v23 = vadd.f32 %v1208_v8, %v1144_v12  ;;  %1317 = vst [vmem:[%s2702_s11 + $0x110] sm:$0xff] %v1253_v63  ;;  %v893_v20 = vld [vmem:[#allocation5 + $0x1d0] sm:$0xff]  ;;  %v3664_v63 = vld [vmem:[#allocation83_spill] sm:$0xff] }
 0x1a5   : > { %1340 = vst [vmem:[%s2702_s11 + $0x1c8] sm:$0xff] %v1276_v47  ;;  %v789_v8 = vld [vmem:[#allocation2 + $0x90] sm:$0xff]  ;;  %v517_v47 = vsel %vm513_vm0, %v2426_v5, %v3664_v63 }
 0x1a6   : > { %1336 = vst [vmem:[%s2702_s11 + $0x1a8] sm:$0xff] %v1272_v23  ;;  %v2941_v61 = vpop.permute.xlu2 %664  ;;  %v853_v6 = vld [vmem:[#allocation5 + $0x90] sm:$0xff]  ;;  %v981_v21 = vmul.f32 %v789_v8, %v3667_v26 }
 0x1a7   : > { %3663 = vst [vmem:[#allocation41_spill] sm:$0xff] %v2941_v61  ;;  %v2943_v24 = vpop.permute.xlu1 %644  ;;  %v734_v30 = vsel %vm706_vm1, %v2883_v58, %v2941_v61  ;;  %v1093_v58 = vadd.f32 %v1029_v29, %v965_v38  ;;  %v785_v60 = vld [vmem:[#allocation2 + $0x70] sm:$0xff]  ;;  %v3668_v38 = vld [vmem:[#allocation82_spill] sm:$0xff] }
 0x1a8   : > { %v724_v51 = vsel %vm706_vm1, %v2796_v19, %v2943_v24  ;;  %v2953_v7 = vpop.permute.xlu0 %642  ;;  %v1201_v49 = vmul.f32 %v945_v42, %v734_v30  ;;  %v849_v19 = vld [vmem:[#allocation5 + $0x70] sm:$0xff]  ;;  %v1045_v29 = vmul.f32 %v853_v6, %v3668_v38  ;;  %v3669_v42 = vld [vmem:[#allocation16_spill] sm:$0xff] }
 0x1a9   : > { %v1161_v12 = vmul.f32 %v905_v32, %v724_v51  ;;  %v723_v4 = vsel %vm706_vm1, %v2685_v53, %v2953_v7  ;;  %v3665_v23 = vld [vmem:[#allocation25_spill] sm:$0xff]  ;;  %v977_v32 = vmul.f32 %v785_v60, %v3669_v42  ;;  %v3672_v6 = vld [vmem:[#allocation76_spill] sm:$0xff] }
 0x1aa   : > { %v1157_v11 = vmul.f32 %v901_v46, %v723_v4  ;;  %v1265_v39 = vadd.f32 %v1201_v49, %v1137_v27  ;;  %v1021_v18 = vmul.f32 %v829_v16, %v3665_v23  ;;  %v3666_v53 = vld [vmem:[#allocation81_spill] sm:$0xff]  ;;  %v1041_v46 = vmul.f32 %v849_v19, %v517_v47  ;;  %v1612_v27 = vld [vmem:[%s2036_s27 + $0x20] sm:$0xff]  ;;  %v3670_v16 = vld [vmem:[#allocation28_spill] sm:$0xff] }
 0x1ab   : > { %v1225_v13 = vadd.f32 %v1161_v12, %v1097_v28  ;;  %v1085_v57 = vmul.f32 %v893_v20, %v3666_v53  ;;  %v957_v30 = vld [vmem:[#allocation7 + $0x1d0] sm:$0xff]  ;;  %v967_v51 = vmul.f32 %v1612_v27, %v775_v48  ;;  %v778_v28 = vld [vmem:[#allocation2 + $0x38] sm:$0xff]  ;;  %v839_v49 = vld [vmem:[#allocation5 + $0x20] sm:$0xff]  ;;  %v547_v20 = vsel %vm513_vm0, %v3670_v16, %v3637_v43 }
 0x1ac   : > { %v1221_v34 = vadd.f32 %v1157_v11, %v1093_v58  ;;  %1329 = vst [vmem:[%s2702_s11 + $0x170] sm:$0xff] %v1265_v39  ;;  %v917_v5 = vld [vmem:[#allocation7 + $0x90] sm:$0xff]  ;;  %v842_v58 = vld [vmem:[#allocation5 + $0x38] sm:$0xff]  ;;  %v563_v11 = vsel %vm513_vm0, %v3672_v6, %v3670_v16  ;;  %v1031_v38 = vmul.f32 %v839_v49, %v547_v20 }
 0x1ad   : > { %1289 = vst [vmem:[%s2702_s11 + $0x30] sm:$0xff] %v1225_v13  ;;  %v913_v8 = vld [vmem:[#allocation7 + $0x70] sm:$0xff]  ;;  %v1149_v60 = vadd.f32 %v1085_v57, %v1021_v18  ;;  %v1109_v13 = vadd.f32 %v1045_v29, %v981_v21  ;;  %v787_v57 = vld [vmem:[#allocation2 + $0x80] sm:$0xff]  ;;  %v790_v29 = vld [vmem:[#allocation2 + $0x98] sm:$0xff] }
 0x1ae   : > { %1285 = vst [vmem:[%s2702_s11 + $0x10] sm:$0xff] %v1221_v34  ;;  %v2976_v12 = vpop.permute.xlu2 %670  ;;  %v801_v39 = vld [vmem:[#allocation2 + $0xf0] sm:$0xff]  ;;  %v3674_v27 = vld [vmem:[#allocation86_spill] sm:$0xff] }
 0x1af   : > { %3671 = vst [vmem:[#allocation35_spill] sm:$0xff] %v2976_v12  ;;  %v2978_v4 = vpop.permute.xlu1 %650  ;;  %v737_v19 = vsel %vm706_vm1, %v2913_v50, %v2976_v12  ;;  %v865_v48 = vld [vmem:[#allocation5 + $0xf0] sm:$0xff]  ;;  %v779_v50 = vld [vmem:[#allocation2 + $0x40] sm:$0xff] }
 0x1b0   : > { %v727_v43 = vsel %vm706_vm1, %v2833_v41, %v2978_v4  ;;  %v2992_v47 = vpop.permute.xlu0 %648  ;;  %v1213_v23 = vmul.f32 %v957_v30, %v737_v19  ;;  %v3673_v34 = vld [vmem:[#allocation29_spill] sm:$0xff]  ;;  %v1105_v41 = vadd.f32 %v1041_v46, %v977_v32  ;;  %v1034_v30 = vmul.f32 %v842_v58, %v563_v11  ;;  %v1614_v46 = vld [vmem:[%s2036_s27 + $0x80] sm:$0xff] }
 0x1b1   : > { %v1173_v53 = vmul.f32 %v917_v5, %v727_v43  ;;  %v726_v18 = vsel %vm706_vm1, %v2711_v52, %v2992_v47  ;;  %v970_v26 = vmul.f32 %v778_v28, %v3673_v34  ;;  %v797_v21 = vld [vmem:[#allocation2 + $0xd0] sm:$0xff]  ;;  %v520_v52 = vsel %vm513_vm0, %v2438_v0, %v3674_v27  ;;  %v1615_v43 = vld [vmem:[%s2036_s27 + $0x40] sm:$0xff] }
 0x1b2   : > { %v1169_v42 = vmul.f32 %v913_v8, %v726_v18  ;;  %v861_v5 = vld [vmem:[#allocation5 + $0xd0] sm:$0xff]  ;;  %v1277_v16 = vadd.f32 %v1213_v23, %v1149_v60  ;;  %v3006_v8 = vmul.f32 %v1614_v46, %v787_v57  ;;  %v3010_v58 = vmul.f32 %v1615_v43, %v779_v50  ;;  %v3676_v57 = vld [vmem:[#allocation18_spill] sm:$0xff]  ;;  %v799_v46 = vld [vmem:[#allocation2 + $0xe0] sm:$0xff] }
 0x1b3   : > { %v1237_v6 = vadd.f32 %v1173_v53, %v1109_v13  ;;  %v1613_v19 = vld [vmem:[%s2036_s27 + $0xf0] sm:$0xff]  ;;  %v3014_v0 = vmul.f32 %v790_v29, %v2325_v54  ;;  %v1053_v60 = vmul.f32 %v861_v5, %v520_v52  ;;  %v903_v13 = vld [vmem:[#allocation7 + $0x20] sm:$0xff]  ;;  %v550_v34 = vsel %vm513_vm0, %v3676_v57, %v3644_v2  ;;  %v854_v50 = vld [vmem:[#allocation5 + $0x98] sm:$0xff] }
 0x1b4   : > { %v993_v28 = vmul.f32 %v1613_v19, %v801_v39  ;;  %v3675_v49 = vld [vmem:[#allocation85_spill] sm:$0xff]  ;;  %v1233_v32 = vadd.f32 %v1169_v42, %v1105_v41  ;;  %1341 = vst [vmem:[%s2702_s11 + $0x1d0] sm:$0xff] %v1277_v16  ;;  %v906_v39 = vld [vmem:[#allocation7 + $0x38] sm:$0xff]  ;;  %v851_v53 = vld [vmem:[#allocation5 + $0x80] sm:$0xff]  ;;  %v1098_v41 = vadd.f32 %v1034_v30, %v970_v26 }
 0x1b5   : > { %v1057_v20 = vmul.f32 %v865_v48, %v3675_v49  ;;  %v1616_v11 = vld [vmem:[%s2036_s27 + $0xd0] sm:$0xff]  ;;  %1301 = vst [vmem:[%s2702_s11 + $0x90] sm:$0xff] %v1237_v6  ;;  %v1095_v48 = vadd.f32 %v1031_v38, %v967_v51  ;;  %v3677_v42 = vld [vmem:[#allocation80_spill] sm:$0xff]  ;;  %v771_v30 = vld [vmem:[#allocation2] sm:$0xff]  ;;  %v1043_v43 = vmul.f32 %v851_v53, %v550_v34 }
 0x1b6   : > { %v989_v18 = vmul.f32 %v1616_v11, %v797_v21  ;;  %v929_v23 = vld [vmem:[#allocation7 + $0xf0] sm:$0xff]  ;;  %v566_v54 = vsel %vm513_vm0, %v3677_v42, %v3676_v57  ;;  %1297 = vst [vmem:[%s2702_s11 + $0x70] sm:$0xff] %v1233_v32  ;;  %v677_v21 = vpop.permute.xlu2 %676  ;;  %v783_v32 = vld [vmem:[#allocation2 + $0x60] sm:$0xff] }
 0x1b7   : > { %v3026_v29 = vpop.permute.xlu1 %656  ;;  %v925_v5 = vld [vmem:[#allocation7 + $0xd0] sm:$0xff]  ;;  %v1121_v52 = vadd.f32 %v1057_v20, %v993_v28  ;;  %v708_v51 = vsel %vm706_vm1, %v2943_v24, %v677_v21  ;;  %v756_v2 = vsel %vm706_vm1, %v677_v21, %v2601_v3  ;;  %v791_v3 = vld [vmem:[#allocation2 + $0xa0] sm:$0xff]  ;;  %v1046_v11 = vmul.f32 %v854_v50, %v566_v54  ;;  %v802_v21 = vld [vmem:[#allocation2 + $0xf8] sm:$0xff] }
 0x1b8   : > { %v730_v26 = vsel %vm706_vm1, %v2863_v59, %v3026_v29  ;;  %v3038_v38 = vpop.permute.xlu0 %654  ;;  %v813_v16 = vld [vmem:[#allocation2 + $0x150] sm:$0xff]  ;;  %v1159_v19 = vmul.f32 %v903_v13, %v756_v2  ;;  %v1162_v28 = vmul.f32 %v906_v39, %v708_v51  ;;  %v1117_v59 = vadd.f32 %v1053_v60, %v989_v18  ;;  %v863_v18 = vld [vmem:[#allocation5 + $0xe0] sm:$0xff]  ;;  %v3681_v60 = vld [vmem:[#allocation30_spill] sm:$0xff] }
 0x1b9   : > { %v877_v6 = vld [vmem:[#allocation5 + $0x150] sm:$0xff]  ;;  %v1185_v49 = vmul.f32 %v929_v23, %v730_v26  ;;  %v3680_v23 = vld [vmem:[#allocation60_spill] sm:$0xff]  ;;  %v553_v50 = vsel %vm513_vm0, %v3681_v60, %v3648_v15 }
 0x1ba   : > { %v3678_v20 = vld [vmem:[#allocation33_spill] sm:$0xff]  ;;  %v1223_v2 = vadd.f32 %v1159_v19, %v1095_v48  ;;  %v1226_v26 = vadd.f32 %v1162_v28, %v1098_v41  ;;  %v3682_v54 = vld [vmem:[#allocation88_spill] sm:$0xff]  ;;  %v1619_v48 = vld [vmem:[%s2036_s27 + $0xa0] sm:$0xff] }
 0x1bb   : > { %v729_v24 = vsel %vm706_vm1, %v3678_v20, %v3038_v38  ;;  %v809_v42 = vld [vmem:[#allocation2 + $0x130] sm:$0xff]  ;;  %v1249_v20 = vadd.f32 %v1185_v49, %v1121_v52  ;;  %v3058_v41 = vmul.f32 %v1619_v48, %v791_v3  ;;  %v1620_v52 = vld [vmem:[%s2036_s27 + $0x60] sm:$0xff] }
 0x1bc   : > { %v1181_v57 = vmul.f32 %v925_v5, %v729_v24  ;;  %v873_v13 = vld [vmem:[#allocation5 + $0x130] sm:$0xff]  ;;  %v1069_v5 = vmul.f32 %v877_v6, %v3682_v54  ;;  %v3061_v19 = vmul.f32 %v1620_v52, %v783_v32  ;;  %1287 = vst [vmem:[%s2702_s11 + $0x20] sm:$0xff] %v1223_v2  ;;  %v1107_v6 = vadd.f32 %v1043_v43, %v3006_v8  ;;  %v915_v3 = vld [vmem:[#allocation7 + $0x80] sm:$0xff]  ;;  %v3684_v8 = vld [vmem:[#allocation84_spill] sm:$0xff] }
 0x1bd   : > { %v3679_v39 = vld [vmem:[#allocation89_spill] sm:$0xff]  ;;  %1290 = vst [vmem:[%s2702_s11 + $0x38] sm:$0xff] %v1226_v26  ;;  %v1055_v32 = vmul.f32 %v863_v18, %v553_v50  ;;  %v1110_v2 = vadd.f32 %v1046_v11, %v3014_v0  ;;  %v569_v43 = vsel %vm513_vm0, %v3684_v8, %v3681_v60  ;;  %v795_v26 = vld [vmem:[#allocation2 + $0xc0] sm:$0xff]  ;;  %v3686_v52 = vld [vmem:[#allocation42_spill] sm:$0xff] }
 0x1be   : > { %v523_v51 = vsel %vm513_vm0, %v3680_v23, %v3679_v39  ;;  %v1617_v53 = vld [vmem:[%s2036_s27 + $0x150] sm:$0xff]  ;;  %v1245_v24 = vadd.f32 %v1181_v57, %v1117_v59  ;;  %v1618_v23 = vld [vmem:[%s2036_s27] sm:$0xff]  ;;  %v1623_v59 = vld [vmem:[%s2036_s27 + $0xf8] sm:$0xff]  ;;  %1313 = vst [vmem:[%s2702_s11 + $0xf0] sm:$0xff] %v1249_v20 }
 0x1bf   : > { %v1005_v34 = vmul.f32 %v1617_v53, %v813_v16  ;;  %v3055_v55 = vmul.f32 %v1618_v23, %v771_v30  ;;  %v1621_v16 = vld [vmem:[%s2036_s27 + $0xe0] sm:$0xff]  ;;  %v1622_v49 = vld [vmem:[%s2036_s27 + $0x130] sm:$0xff]  ;;  %v3070_v57 = vmul.f32 %v1623_v59, %v802_v21  ;;  %v1065_v30 = vmul.f32 %v873_v13, %v523_v51  ;;  %v918_v53 = vld [vmem:[#allocation7 + $0x98] sm:$0xff]  ;;  %v683_v21 = vpop.permute.xlu2 %682  ;;  %v3083_v13 = vpop.permute.xlu1 %662 }
 0x1c0   : > { %v3064_v28 = vmul.f32 %v1621_v16, %v799_v46  ;;  %v1001_v15 = vmul.f32 %v1622_v49, %v809_v42  ;;  %v941_v54 = vld [vmem:[#allocation7 + $0x150] sm:$0xff]  ;;  %v3683_v23 = vld [vmem:[#allocation34_spill] sm:$0xff]  ;;  %1309 = vst [vmem:[%s2702_s11 + $0xd0] sm:$0xff] %v1245_v24  ;;  %v759_v0 = vsel %vm706_vm1, %v683_v21, %v2619_v17  ;;  %v733_v11 = vsel %vm706_vm1, %v2893_v36, %v3083_v13  ;;  %v3096_v20 = vpop.permute.xlu0 %660  ;;  %v811_v60 = vld [vmem:[#allocation2 + $0x140] sm:$0xff] }
 0x1c1   : > { %v556_v46 = vsel %vm513_vm0, %v3683_v23, %v3651_v25  ;;  %v866_v42 = vld [vmem:[#allocation5 + $0xf8] sm:$0xff]  ;;  %v937_v51 = vld [vmem:[#allocation7 + $0x130] sm:$0xff]  ;;  %v1133_v18 = vadd.f32 %v1069_v5, %v1005_v34  ;;  %v711_v25 = vsel %vm706_vm1, %v2978_v4, %v683_v21  ;;  %3685 = vst [vmem:[#allocation65_spill] sm:$0xff] %v3096_v20  ;;  %v1171_v34 = vmul.f32 %v915_v3, %v759_v0  ;;  %v823_v17 = vld [vmem:[#allocation2 + $0x1a0] sm:$0xff] }
 0x1c2   : > { %v825_v50 = vld [vmem:[#allocation2 + $0x1b0] sm:$0xff]  ;;  %v1174_v5 = vmul.f32 %v918_v53, %v711_v25  ;;  %v1197_v24 = vmul.f32 %v941_v54, %v733_v11  ;;  %v732_v4 = vsel %vm706_vm1, %v3686_v52, %v3096_v20  ;;  %v814_v49 = vld [vmem:[#allocation2 + $0x158] sm:$0xff]  ;;  %v3688_v36 = vld [vmem:[#allocation24_spill] sm:$0xff]  ;;  %v1058_v21 = vmul.f32 %v866_v42, %v569_v43 }
 0x1c3   : > { %v889_v48 = vld [vmem:[#allocation5 + $0x1b0] sm:$0xff]  ;;  %v1129_v3 = vadd.f32 %v1065_v30, %v1001_v15  ;;  %v1193_v53 = vmul.f32 %v937_v51, %v732_v4  ;;  %v875_v54 = vld [vmem:[#allocation5 + $0x140] sm:$0xff]  ;;  %v3689_v11 = vld [vmem:[#allocation92_spill] sm:$0xff]  ;;  %v1235_v45 = vadd.f32 %v1171_v34, %v1107_v6  ;;  %v1003_v20 = vmul.f32 %v1626_v40, %v811_v60 }
 0x1c4   : > { %v821_v16 = vld [vmem:[#allocation2 + $0x190] sm:$0xff]  ;;  %v835_v25 = vld [vmem:[#allocation5] sm:$0xff]  ;;  %v1238_v61 = vadd.f32 %v1174_v5, %v1110_v2  ;;  %v1261_v62 = vadd.f32 %v1197_v24, %v1133_v18  ;;  %v3117_v44 = vmul.f32 %v1627_v9, %v823_v17  ;;  %v1629_v6 = vld [vmem:[%s2036_s27 + $0x158] sm:$0xff]  ;;  %v1067_v18 = vmul.f32 %v875_v54, %v556_v46 }
 0x1c5   : > { %v3687_v59 = vld [vmem:[#allocation45_spill] sm:$0xff]  ;;  %v3690_v52 = vld [vmem:[#allocation63_spill] sm:$0xff]  ;;  %v1257_v4 = vadd.f32 %v1193_v53, %v1129_v3  ;;  %v3121_v2 = vmul.f32 %v1629_v6, %v814_v49  ;;  %1299 = vst [vmem:[%s2702_s11 + $0x80] sm:$0xff] %v1235_v45  ;;  %v930_v5 = vld [vmem:[#allocation7 + $0xf8] sm:$0xff] }
 0x1c6   : > { %v546_v8 = vsel %vm513_vm0, %v3688_v36, %v3687_v59  ;;  %v885_v0 = vld [vmem:[#allocation5 + $0x190] sm:$0xff]  ;;  %v526_v12 = vsel %vm513_vm0, %v3690_v52, %v3689_v11  ;;  %v1624_v59 = vld [vmem:[%s2036_s27 + $0xc0] sm:$0xff]  ;;  %1302 = vst [vmem:[%s2702_s11 + $0x98] sm:$0xff] %v1238_v61  ;;  %v3692_v9 = vld [vmem:[#allocation38_spill] sm:$0xff] }
 0x1c7   : > { %v3111_v42 = vmul.f32 %v1624_v59, %v795_v26  ;;  %v1625_v15 = vld [vmem:[%s2036_s27 + $0x1b0] sm:$0xff]  ;;  %v3691_v43 = vld [vmem:[#allocation91_spill] sm:$0xff]  ;;  %v1119_v26 = vadd.f32 %v1055_v32, %v3064_v28  ;;  %v1077_v34 = vmul.f32 %v885_v0, %v526_v12  ;;  %v559_v60 = vsel %vm513_vm0, %v3692_v9, %v3655_v22  ;;  %1325 = vst [vmem:[%s2702_s11 + $0x150] sm:$0xff] %v1261_v62  ;;  %v689_v12 = vpop.permute.xlu2 %688  ;;  %v3140_v46 = vpop.permute.xlu1 %668  ;;  %v878_v49 = vld [vmem:[#allocation5 + $0x158] sm:$0xff] }
 0x1c8   : > { %v1017_v30 = vmul.f32 %v1625_v15, %v825_v50  ;;  %v1081_v51 = vmul.f32 %v889_v48, %v3691_v43  ;;  %v1628_v52 = vld [vmem:[%s2036_s27 + $0x190] sm:$0xff]  ;;  %v1027_v50 = vmul.f32 %v835_v25, %v546_v8  ;;  %v927_v48 = vld [vmem:[#allocation7 + $0xe0] sm:$0xff]  ;;  %v1122_v28 = vadd.f32 %v1058_v21, %v3070_v57  ;;  %1321 = vst [vmem:[%s2702_s11 + $0x130] sm:$0xff] %v1257_v4  ;;  %v782_v3 = vld [vmem:[#allocation2 + $0x58] sm:$0xff] }
 0x1c9   : > { %v1013_v11 = vmul.f32 %v1628_v52, %v821_v16  ;;  %v953_v40 = vld [vmem:[#allocation7 + $0x1b0] sm:$0xff]  ;;  %v3693_v24 = vld [vmem:[#allocation51_spill] sm:$0xff]  ;;  %v714_v22 = vsel %vm706_vm1, %v3026_v29, %v689_v12  ;;  %v762_v57 = vsel %vm706_vm1, %v689_v12, %v2637_v10  ;;  %v736_v62 = vsel %vm706_vm1, %v2923_v35, %v3140_v46  ;;  %v774_v59 = vld [vmem:[#allocation2 + $0x18] sm:$0xff] }
 0x1ca   : > { %v3694_v17 = vld [vmem:[#allocation27_spill] sm:$0xff]  ;;  %v949_v16 = vld [vmem:[#allocation7 + $0x190] sm:$0xff]  ;;  %v1145_v8 = vadd.f32 %v1081_v51, %v1017_v30  ;;  %v1183_v53 = vmul.f32 %v927_v48, %v762_v57  ;;  %v1186_v54 = vmul.f32 %v930_v5, %v714_v22  ;;  %v1209_v25 = vmul.f32 %v953_v40, %v736_v62  ;;  %v826_v10 = vld [vmem:[#allocation2 + $0x1b8] sm:$0xff] }
 0x1cb   : > { %v549_v45 = vsel %vm513_vm0, %v3694_v17, %v3693_v24  ;;  %v3695_v32 = vld [vmem:[#allocation87_spill] sm:$0xff]  ;;  %v833_v21 = vld [vmem:[#allocation2 + $0x1f0] sm:$0xff]  ;;  %v3697_v30 = vld [vmem:[#allocation52_spill] sm:$0xff]  ;;  %v562_v51 = vsel %vm513_vm0, %v2570_v1, %v3688_v36  ;;  %v1141_v4 = vadd.f32 %v1077_v34, %v1013_v11 }
 0x1cc   : > { %v572_v61 = vsel %vm513_vm0, %v3695_v32, %v3683_v23  ;;  %v3153_v23 = vpop.permute.xlu0 %666  ;;  %v3696_v0 = vld [vmem:[#allocation31_spill] sm:$0xff]  ;;  %v838_v5 = vld [vmem:[#allocation5 + $0x18] sm:$0xff]  ;;  %v1247_v24 = vadd.f32 %v1183_v53, %v1119_v26  ;;  %v1250_v32 = vadd.f32 %v1186_v54, %v1122_v28  ;;  %v1273_v12 = vadd.f32 %v1209_v25, %v1145_v8  ;;  %v1630_v22 = vld [vmem:[%s2036_s27 + $0x1f0] sm:$0xff] }
 0x1cd   : > { %v735_v29 = vsel %vm706_vm1, %v3696_v0, %v3153_v23  ;;  %v887_v15 = vld [vmem:[#allocation5 + $0x1a0] sm:$0xff]  ;;  %v1070_v40 = vmul.f32 %v878_v49, %v572_v61  ;;  %v1025_v57 = vmul.f32 %v1630_v22, %v833_v21  ;;  %v1631_v62 = vld [vmem:[%s2036_s27 + $0x58] sm:$0xff]  ;;  %v3700_v36 = vld [vmem:[#allocation64_spill] sm:$0xff]  ;;  %v1131_v61 = vadd.f32 %v1067_v18, %v1003_v20 }
 0x1ce   : > { %v3698_v43 = vld [vmem:[#allocation23_spill] sm:$0xff]  ;;  %v1205_v52 = vmul.f32 %v949_v16, %v735_v29  ;;  %v3169_v0 = vmul.f32 %v1631_v62, %v782_v3  ;;  %v3699_v1 = vld [vmem:[#allocation94_spill] sm:$0xff]  ;;  %v1091_v26 = vadd.f32 %v1027_v50, %v3055_v55  ;;  %1311 = vst [vmem:[%s2702_s11 + $0xe0] sm:$0xff] %v1247_v24  ;;  %v1079_v21 = vmul.f32 %v887_v15, %v559_v60 }
 0x1cf   : > { %v548_v35 = vsel %vm513_vm0, %v3698_v43, %v3697_v30  ;;  %v847_v6 = vld [vmem:[#allocation5 + $0x60] sm:$0xff]  ;;  %v897_v30 = vld [vmem:[#allocation5 + $0x1f0] sm:$0xff]  ;;  %v529_v11 = vsel %vm513_vm0, %v3700_v36, %v3699_v1  ;;  %v1632_v16 = vld [vmem:[%s2036_s27 + $0x18] sm:$0xff]  ;;  %v1030_v54 = vmul.f32 %v838_v5, %v562_v51  ;;  %1314 = vst [vmem:[%s2702_s11 + $0xf8] sm:$0xff] %v1250_v32  ;;  %v1134_v20 = vadd.f32 %v1070_v40, %v3121_v2 }
 0x1d0   : > { %v843_v48 = vld [vmem:[#allocation5 + $0x40] sm:$0xff]  ;;  %v1269_v34 = vadd.f32 %v1205_v52, %v1141_v4  ;;  %v966_v29 = vmul.f32 %v1632_v16, %v774_v59  ;;  %v1633_v28 = vld [vmem:[%s2036_s27 + $0x1b8] sm:$0xff]  ;;  %v1039_v3 = vmul.f32 %v847_v6, %v549_v45  ;;  %v3702_v59 = vld [vmem:[#allocation32_spill] sm:$0xff]  ;;  %v1089_v60 = vmul.f32 %v897_v30, %v529_v11  ;;  %1337 = vst [vmem:[%s2702_s11 + $0x1b0] sm:$0xff] %v1273_v12  ;;  %v695_v45 = vpop.permute.xlu2 %694 }
 0x1d1   : > { %v3178_v49 = vmul.f32 %v1633_v28, %v826_v10  ;;  %v939_v8 = vld [vmem:[#allocation7 + $0x140] sm:$0xff]  ;;  %v1035_v53 = vmul.f32 %v843_v48, %v548_v35  ;;  %v942_v25 = vld [vmem:[#allocation7 + $0x158] sm:$0xff]  ;;  %v675_v10 = vpop.permute.xlu1 %674  ;;  %v717_v35 = vsel %vm706_vm1, %v3083_v13, %v695_v45  ;;  %v765_v51 = vsel %vm706_vm1, %v695_v45, %v2655_v37  ;;  %v3704_v6 = vld [vmem:[#allocation93_spill] sm:$0xff] }
 0x1d2   : > { %v899_v22 = vld [vmem:[#allocation7] sm:$0xff]  ;;  %v902_v4 = vld [vmem:[#allocation7 + $0x18] sm:$0xff]  ;;  %1333 = vst [vmem:[%s2702_s11 + $0x190] sm:$0xff] %v1269_v34  ;;  %v707_v2 = vsel %vm706_vm1, %v2953_v7, %v675_v10  ;;  %v1195_v5 = vmul.f32 %v939_v8, %v765_v51  ;;  %v1198_v40 = vmul.f32 %v942_v25, %v717_v35  ;;  %v961_v12 = vld [vmem:[#allocation7 + $0x1f0] sm:$0xff]  ;;  %v1094_v7 = vadd.f32 %v1030_v54, %v966_v29 }
 0x1d3   : > { %v3701_v52 = vld [vmem:[#allocation54_spill] sm:$0xff]  ;;  %v1158_v32 = vmul.f32 %v902_v4, %v707_v2  ;;  %v565_v36 = vsel %vm513_vm0, %v3664_v63, %v3694_v17  ;;  %v855_v29 = vld [vmem:[#allocation5 + $0xa0] sm:$0xff]  ;;  %v3707_v4 = vld [vmem:[#allocation20_spill] sm:$0xff]  ;;  %v1153_v17 = vadd.f32 %v1089_v60, %v1025_v57 }
 0x1d4   : > { %v552_v55 = vsel %vm513_vm0, %v3702_v59, %v3701_v52  ;;  %v3703_v18 = vld [vmem:[#allocation90_spill] sm:$0xff]  ;;  %v3205_v48 = vpop.permute.xlu0 %672  ;;  %v1259_v8 = vadd.f32 %v1195_v5, %v1131_v61  ;;  %v1262_v25 = vadd.f32 %v1198_v40, %v1134_v20  ;;  %v3706_v54 = vld [vmem:[#allocation55_spill] sm:$0xff]  ;;  %v1143_v61 = vadd.f32 %v1079_v21, %v3117_v44 }
 0x1d5   : > { %v575_v50 = vsel %vm513_vm0, %v3703_v18, %v3692_v9  ;;  %v890_v15 = vld [vmem:[#allocation5 + $0x1b8] sm:$0xff]  ;;  %v755_v9 = vsel %vm706_vm1, %v675_v10, %v3704_v6  ;;  %v738_v11 = vsel %vm706_vm1, %v2821_v31, %v3205_v48  ;;  %v551_v63 = vsel %vm513_vm0, %v3707_v4, %v3706_v54  ;;  %v951_v20 = vld [vmem:[#allocation7 + $0x1a0] sm:$0xff] }
 0x1d6   : > { %v1155_v24 = vmul.f32 %v899_v22, %v755_v9  ;;  %v786_v13 = vld [vmem:[#allocation2 + $0x78] sm:$0xff]  ;;  %v1082_v28 = vmul.f32 %v890_v15, %v575_v50  ;;  %v859_v22 = vld [vmem:[#allocation5 + $0xc0] sm:$0xff]  ;;  %v1222_v52 = vadd.f32 %v1158_v32, %v1094_v7  ;;  %v1217_v18 = vmul.f32 %v961_v12, %v738_v11  ;;  %1323 = vst [vmem:[%s2702_s11 + $0x140] sm:$0xff] %v1259_v8 }
 0x1d7   : > { %v798_v62 = vld [vmem:[#allocation2 + $0xd8] sm:$0xff]  ;;  %v1099_v50 = vadd.f32 %v1035_v53, %v3010_v58  ;;  %1326 = vst [vmem:[%s2702_s11 + $0x158] sm:$0xff] %v1262_v25  ;;  %v911_v2 = vld [vmem:[#allocation7 + $0x60] sm:$0xff]  ;;  %v1051_v9 = vmul.f32 %v859_v22, %v552_v55  ;;  %v1047_v5 = vmul.f32 %v855_v29, %v551_v63  ;;  %v568_v44 = vsel %vm513_vm0, %v3674_v27, %v3702_v59 }
 0x1d8   : > { %v3705_v30 = vld [vmem:[#allocation66_spill] sm:$0xff]  ;;  %v1281_v57 = vadd.f32 %v1217_v18, %v1153_v17  ;;  %v701_v21 = vpop.permute.xlu2 %700  ;;  %1286 = vst [vmem:[%s2702_s11 + $0x18] sm:$0xff] %v1222_v52  ;;  %v3708_v40 = vld [vmem:[#allocation95_spill] sm:$0xff] }
 0x1d9   : > { %v564_v37 = vsel %vm513_vm0, %v3705_v30, %v3698_v43  ;;  %v846_v34 = vld [vmem:[#allocation5 + $0x58] sm:$0xff]  ;;  %v1219_v43 = vadd.f32 %v1155_v24, %v1091_v26  ;;  %v1103_v26 = vadd.f32 %v1039_v3, %v3061_v19  ;;  %v1146_v19 = vadd.f32 %v1082_v28, %v3178_v49  ;;  %v681_v58 = vpop.permute.xlu1 %680  ;;  %v803_v30 = vld [vmem:[#allocation2 + $0x100] sm:$0xff]  ;;  %v3710_v28 = vld [vmem:[#allocation69_spill] sm:$0xff] }
 0x1da   : > { %v850_v16 = vld [vmem:[#allocation5 + $0x78] sm:$0xff]  ;;  %v1038_v15 = vmul.f32 %v846_v34, %v564_v37  ;;  %v720_v3 = vsel %vm706_vm1, %v3140_v46, %v701_v21  ;;  %v768_v53 = vsel %vm706_vm1, %v701_v21, %v2667_v33  ;;  %v710_v55 = vsel %vm706_vm1, %v2992_v47, %v681_v58  ;;  %1345 = vst [vmem:[%s2702_s11 + $0x1f0] sm:$0xff] %v1281_v57  ;;  %v907_v46 = vld [vmem:[#allocation7 + $0x40] sm:$0xff] }
 0x1db   : > { %v1634_v45 = vld [vmem:[%s2036_s27 + $0x78] sm:$0xff]  ;;  %v1042_v51 = vmul.f32 %v850_v16, %v565_v36  ;;  %1283 = vst [vmem:[%s2702_s11] sm:$0xff] %v1219_v43  ;;  %v758_v27 = vsel %vm706_vm1, %v681_v58, %v3708_v40  ;;  %v1207_v24 = vmul.f32 %v951_v20, %v768_v53  ;;  %v807_v33 = vld [vmem:[#allocation2 + $0x120] sm:$0xff]  ;;  %v3709_v36 = vld [vmem:[#allocation96_spill] sm:$0xff]  ;;  %v567_v8 = vsel %vm513_vm0, %v3710_v28, %v3707_v4 }
 0x1dc   : > { %v978_v31 = vmul.f32 %v1634_v45, %v786_v13  ;;  %v1635_v10 = vld [vmem:[%s2036_s27 + $0xd8] sm:$0xff]  ;;  %v679_v49 = vpop.permute.xlu0 %678  ;;  %v1167_v12 = vmul.f32 %v911_v2, %v758_v27  ;;  %v1102_v37 = vadd.f32 %v1038_v15, %v3169_v0  ;;  %v1636_v63 = vld [vmem:[%s2036_s27 + $0x100] sm:$0xff]  ;;  %v3712_v2 = vld [vmem:[#allocation36_spill] sm:$0xff] }
 0x1dd   : > { %v3225_v35 = vmul.f32 %v1635_v10, %v798_v62  ;;  %v954_v60 = vld [vmem:[#allocation7 + $0x1b8] sm:$0xff]  ;;  %v709_v7 = vsel %vm706_vm1, %v2851_v14, %v679_v49  ;;  %v757_v11 = vsel %vm706_vm1, %v679_v49, %v3709_v36  ;;  %v1271_v0 = vadd.f32 %v1207_v24, %v1143_v61  ;;  %v1637_v52 = vld [vmem:[%s2036_s27 + $0x120] sm:$0xff]  ;;  %v3716_v24 = vld [vmem:[#allocation48_spill] sm:$0xff] }
 0x1de   : > { %v914_v6 = vld [vmem:[#allocation7 + $0x78] sm:$0xff]  ;;  %v1210_v32 = vmul.f32 %v954_v60, %v720_v3  ;;  %v1106_v47 = vadd.f32 %v1042_v51, %v978_v31  ;;  %v1231_v43 = vadd.f32 %v1167_v12, %v1103_v26  ;;  %v1163_v14 = vmul.f32 %v907_v46, %v757_v11  ;;  %v923_v61 = vld [vmem:[#allocation7 + $0xc0] sm:$0xff]  ;;  %v3711_v60 = vld [vmem:[#allocation56_spill] sm:$0xff] }
 0x1df   : > { %v862_v59 = vld [vmem:[#allocation5 + $0xd8] sm:$0xff]  ;;  %v1170_v13 = vmul.f32 %v914_v6, %v710_v55  ;;  %v995_v17 = vmul.f32 %v1636_v63, %v803_v30  ;;  %v999_v18 = vmul.f32 %v1637_v52, %v807_v33  ;;  %1335 = vst [vmem:[%s2702_s11 + $0x1a0] sm:$0xff] %v1271_v0  ;;  %v1115_v26 = vadd.f32 %v1051_v9, %v3111_v42  ;;  %v871_v57 = vld [vmem:[#allocation5 + $0x120] sm:$0xff] }
 0x1e0   : > { %v910_v62 = vld [vmem:[#allocation7 + $0x58] sm:$0xff]  ;;  %v1274_v25 = vadd.f32 %v1210_v32, %v1146_v19  ;;  %v1054_v22 = vmul.f32 %v862_v59, %v568_v44  ;;  %v1227_v20 = vadd.f32 %v1163_v14, %v1099_v50  ;;  %v1111_v51 = vadd.f32 %v1047_v5, %v3058_v41  ;;  %v3713_v44 = vld [vmem:[#allocation57_spill] sm:$0xff]  ;;  %1295 = vst [vmem:[%s2702_s11 + $0x60] sm:$0xff] %v1231_v43  ;;  %v919_v58 = vld [vmem:[#allocation7 + $0xa0] sm:$0xff] }
 0x1e1   : > { %v794_v34 = vld [vmem:[#allocation2 + $0xb8] sm:$0xff]  ;;  %v1234_v29 = vadd.f32 %v1170_v13, %v1106_v47  ;;  %v1166_v54 = vmul.f32 %v910_v62, %v709_v7  ;;  %v555_v6 = vsel %vm513_vm0, %v3712_v2, %v3711_v60  ;;  %v3714_v19 = vld [vmem:[#allocation21_spill] sm:$0xff]  ;;  %v687_v21 = vpop.permute.xlu1 %686  ;;  %v867_v53 = vld [vmem:[#allocation5 + $0x100] sm:$0xff]  ;;  %v571_v42 = vsel %vm513_vm0, %v3679_v39, %v3712_v2 }
 0x1e2   : > { %v858_v16 = vld [vmem:[#allocation5 + $0xb8] sm:$0xff]  ;;  %1338 = vst [vmem:[%s2702_s11 + $0x1b8] sm:$0xff] %v1274_v25  ;;  %v554_v50 = vsel %vm513_vm0, %v3714_v19, %v3713_v44  ;;  %v1118_v41 = vadd.f32 %v1054_v22, %v3225_v35  ;;  %v713_v9 = vsel %vm706_vm1, %v3038_v38, %v687_v21  ;;  %v3715_v5 = vld [vmem:[#allocation97_spill] sm:$0xff]  ;;  %v1063_v38 = vmul.f32 %v871_v57, %v555_v6  ;;  %v3718_v47 = vld [vmem:[#allocation72_spill] sm:$0xff] }
 0x1e3   : > { %v1638_v45 = vld [vmem:[%s2036_s27 + $0xb8] sm:$0xff]  ;;  %v1050_v10 = vmul.f32 %v858_v16, %v567_v8  ;;  %v1230_v4 = vadd.f32 %v1166_v54, %v1102_v37  ;;  %1298 = vst [vmem:[%s2702_s11 + $0x78] sm:$0xff] %v1234_v29  ;;  %v761_v55 = vsel %vm706_vm1, %v687_v21, %v3715_v5  ;;  %v1059_v33 = vmul.f32 %v867_v53, %v554_v50  ;;  %v935_v14 = vld [vmem:[#allocation7 + $0x120] sm:$0xff]  ;;  %v3721_v60 = vld [vmem:[#allocation92_spill] sm:$0xff] }
 0x1e4   : > { %v986_v31 = vmul.f32 %v1638_v45, %v794_v34  ;;  %v926_v15 = vld [vmem:[#allocation7 + $0xd8] sm:$0xff]  ;;  %v685_v40 = vpop.permute.xlu0 %684  ;;  %1291 = vst [vmem:[%s2702_s11 + $0x40] sm:$0xff] %v1227_v20  ;;  %v1179_v59 = vmul.f32 %v923_v61, %v761_v55  ;;  %v570_v7 = vsel %vm513_vm0, %v3718_v47, %v3714_v19  ;;  %v819_v34 = vld [vmem:[#allocation2 + $0x180] sm:$0xff]  ;;  %v1127_v45 = vadd.f32 %v1063_v38, %v999_v18  ;;  %v3722_v6 = vld [vmem:[#allocation65_spill] sm:$0xff] }
 0x1e5   : > { %v922_v3 = vld [vmem:[#allocation7 + $0xb8] sm:$0xff]  ;;  %v1182_v35 = vmul.f32 %v926_v15, %v713_v9  ;;  %v712_v39 = vsel %vm706_vm1, %v3716_v24, %v685_v40  ;;  %1294 = vst [vmem:[%s2702_s11 + $0x58] sm:$0xff] %v1230_v4  ;;  %v1641_v63 = vld [vmem:[%s2036_s27 + $0x180] sm:$0xff]  ;;  %v3720_v4 = vld [vmem:[#allocation40_spill] sm:$0xff] }
 0x1e6   : > { %v810_v27 = vld [vmem:[#allocation2 + $0x138] sm:$0xff]  ;;  %v1114_v13 = vadd.f32 %v1050_v10, %v986_v31  ;;  %v1178_v62 = vmul.f32 %v922_v3, %v712_v39  ;;  %v1243_v36 = vadd.f32 %v1179_v59, %v1115_v26  ;;  %v1011_v52 = vmul.f32 %v1641_v63, %v819_v34  ;;  %v883_v10 = vld [vmem:[#allocation5 + $0x180] sm:$0xff]  ;;  %v3724_v53 = vld [vmem:[#allocation49_spill] sm:$0xff] }
 0x1e7   : > { %v874_v49 = vld [vmem:[#allocation5 + $0x138] sm:$0xff]  ;;  %v1246_v11 = vadd.f32 %v1182_v35, %v1118_v41  ;;  %v1123_v31 = vadd.f32 %v1059_v33, %v995_v17  ;;  %v931_v26 = vld [vmem:[#allocation7 + $0x100] sm:$0xff]  ;;  %v574_v2 = vsel %vm513_vm0, %v3721_v60, %v3720_v4 }
 0x1e8   : > { %v3717_v32 = vld [vmem:[#allocation98_spill] sm:$0xff]  ;;  %v1066_v8 = vmul.f32 %v874_v49, %v571_v42  ;;  %v1242_v25 = vadd.f32 %v1178_v62, %v1114_v13  ;;  %1307 = vst [vmem:[%s2702_s11 + $0xc0] sm:$0xff] %v1243_v36  ;;  %v3723_v18 = vld [vmem:[#allocation99_spill] sm:$0xff]  ;;  %v3725_v42 = vld [vmem:[#allocation100_spill] sm:$0xff] }
 0x1e9   : > { %v760_v12 = vsel %vm706_vm1, %v685_v40, %v3717_v32  ;;  %v806_v30 = vld [vmem:[#allocation2 + $0x118] sm:$0xff]  ;;  %1310 = vst [vmem:[%s2702_s11 + $0xd8] sm:$0xff] %v1246_v11  ;;  %v693_v15 = vpop.permute.xlu1 %692  ;;  %v815_v5 = vld [vmem:[#allocation2 + $0x160] sm:$0xff] }
 0x1ea   : > { %v1175_v46 = vmul.f32 %v919_v58, %v760_v12  ;;  %v870_v37 = vld [vmem:[#allocation5 + $0x118] sm:$0xff]  ;;  %1306 = vst [vmem:[%s2702_s11 + $0xb8] sm:$0xff] %v1242_v25  ;;  %v716_v17 = vsel %vm706_vm1, %v3722_v6, %v693_v15  ;;  %v764_v44 = vsel %vm706_vm1, %v693_v15, %v3723_v18  ;;  %v879_v35 = vld [vmem:[#allocation5 + $0x160] sm:$0xff] }
 0x1eb   : > { %v1639_v16 = vld [vmem:[%s2036_s27 + $0x138] sm:$0xff]  ;;  %v1062_v29 = vmul.f32 %v870_v37, %v570_v7  ;;  %v1191_v58 = vmul.f32 %v935_v14, %v764_v44  ;;  %v3726_v24 = vld [vmem:[#allocation59_spill] sm:$0xff] }
 0x1ec   : > { %v1002_v28 = vmul.f32 %v1639_v16, %v810_v27  ;;  %v1239_v0 = vadd.f32 %v1175_v46, %v1111_v51  ;;  %v1640_v43 = vld [vmem:[%s2036_s27 + $0x118] sm:$0xff]  ;;  %v691_v19 = vpop.permute.xlu0 %690  ;;  %v3728_v38 = vld [vmem:[#allocation75_spill] sm:$0xff] }
 0x1ed   : > { %v998_v22 = vmul.f32 %v1640_v43, %v806_v30  ;;  %v938_v54 = vld [vmem:[#allocation7 + $0x138] sm:$0xff]  ;;  %v715_v41 = vsel %vm706_vm1, %v3724_v53, %v691_v19  ;;  %v763_v9 = vsel %vm706_vm1, %v691_v19, %v3725_v42  ;;  %v1255_v46 = vadd.f32 %v1191_v58, %v1127_v45  ;;  %v831_v30 = vld [vmem:[#allocation2 + $0x1e0] sm:$0xff]  ;;  %v3732_v19 = vld [vmem:[#allocation41_spill] sm:$0xff] }
 0x1ee   : > { %v3719_v20 = vld [vmem:[#allocation58_spill] sm:$0xff]  ;;  %1303 = vst [vmem:[%s2702_s11 + $0xa0] sm:$0xff] %v1239_v0  ;;  %v1130_v57 = vadd.f32 %v1066_v8, %v1002_v28  ;;  %v1194_v3 = vmul.f32 %v938_v54, %v716_v17  ;;  %v1187_v27 = vmul.f32 %v931_v26, %v763_v9  ;;  %v1643_v34 = vld [vmem:[%s2036_s27 + $0x160] sm:$0xff] }
 0x1ef   : > { %v558_v61 = vsel %vm513_vm0, %v3720_v4, %v3719_v20  ;;  %v934_v51 = vld [vmem:[#allocation7 + $0x118] sm:$0xff]  ;;  %v1126_v40 = vadd.f32 %v1062_v29, %v998_v22  ;;  %1319 = vst [vmem:[%s2702_s11 + $0x120] sm:$0xff] %v1255_v46  ;;  %v1007_v16 = vmul.f32 %v1643_v34, %v815_v5  ;;  %v947_v43 = vld [vmem:[#allocation7 + $0x180] sm:$0xff] }
 0x1f0   : > { %v822_v50 = vld [vmem:[#allocation2 + $0x198] sm:$0xff]  ;;  %v1075_v55 = vmul.f32 %v883_v10, %v558_v61  ;;  %v1190_v49 = vmul.f32 %v934_v51, %v715_v41  ;;  %v1258_v62 = vadd.f32 %v1194_v3, %v1130_v57  ;;  %v1251_v36 = vadd.f32 %v1187_v27, %v1123_v31  ;;  %v1645_v29 = vld [vmem:[%s2036_s27 + $0x1e0] sm:$0xff]  ;;  %v3729_v10 = vld [vmem:[#allocation61_spill] sm:$0xff] }
 0x1f1   : > { %v886_v21 = vld [vmem:[#allocation5 + $0x198] sm:$0xff]  ;;  %v1023_v14 = vmul.f32 %v1645_v29, %v831_v30  ;;  %v699_v4 = vpop.permute.xlu1 %698  ;;  %v943_v61 = vld [vmem:[#allocation7 + $0x160] sm:$0xff]  ;;  %v3731_v57 = vld [vmem:[#allocation101_spill] sm:$0xff] }
 0x1f2   : > { %v818_v59 = vld [vmem:[#allocation2 + $0x178] sm:$0xff]  ;;  %v1078_v7 = vmul.f32 %v886_v21, %v574_v2  ;;  %v1254_v11 = vadd.f32 %v1190_v49, %v1126_v40  ;;  %1322 = vst [vmem:[%s2702_s11 + $0x138] sm:$0xff] %v1258_v62  ;;  %v1139_v45 = vadd.f32 %v1075_v55, %v1011_v52  ;;  %v719_v52 = vsel %vm706_vm1, %v3153_v23, %v699_v4  ;;  %v895_v6 = vld [vmem:[#allocation5 + $0x1e0] sm:$0xff] }
 0x1f3   : > { %v3727_v39 = vld [vmem:[#allocation22_spill] sm:$0xff]  ;;  %1315 = vst [vmem:[%s2702_s11 + $0x100] sm:$0xff] %v1251_v36  ;;  %v767_v60 = vsel %vm706_vm1, %v699_v4, %v3731_v57  ;;  %v827_v58 = vld [vmem:[#allocation2 + $0x1c0] sm:$0xff] }
 0x1f4   : > { %v557_v32 = vsel %vm513_vm0, %v3727_v39, %v3726_v24  ;;  %v882_v12 = vld [vmem:[#allocation5 + $0x178] sm:$0xff]  ;;  %v573_v13 = vsel %vm513_vm0, %v3728_v38, %v3727_v39  ;;  %1318 = vst [vmem:[%s2702_s11 + $0x118] sm:$0xff] %v1254_v11  ;;  %v697_v2 = vpop.permute.xlu0 %696  ;;  %v1203_v18 = vmul.f32 %v947_v43, %v767_v60  ;;  %v891_v9 = vld [vmem:[#allocation5 + $0x1c0] sm:$0xff] }
 0x1f5   : > { %v1642_v33 = vld [vmem:[%s2036_s27 + $0x198] sm:$0xff]  ;;  %v1071_v0 = vmul.f32 %v879_v35, %v557_v32  ;;  %v1074_v25 = vmul.f32 %v882_v12, %v573_v13  ;;  %v3736_v49 = vld [vmem:[#allocation79_spill] sm:$0xff] }
 0x1f6   : > { %v1014_v37 = vmul.f32 %v1642_v33, %v822_v50  ;;  %v834_v47 = vld [vmem:[#allocation2 + $0x1f8] sm:$0xff]  ;;  %v718_v50 = vsel %vm706_vm1, %v3732_v19, %v697_v2  ;;  %v1267_v35 = vadd.f32 %v1203_v18, %v1139_v45  ;;  %v1647_v13 = vld [vmem:[%s2036_s27 + $0x1c0] sm:$0xff] }
 0x1f7   : > { %v1644_v28 = vld [vmem:[%s2036_s27 + $0x178] sm:$0xff]  ;;  %v1135_v23 = vadd.f32 %v1071_v0, %v1007_v16  ;;  %v1019_v46 = vmul.f32 %v1647_v13, %v827_v58  ;;  %v955_v11 = vld [vmem:[#allocation7 + $0x1c0] sm:$0xff] }
 0x1f8   : > { %v1010_v8 = vmul.f32 %v1644_v28, %v818_v59  ;;  %v950_v22 = vld [vmem:[#allocation7 + $0x198] sm:$0xff]  ;;  %v1142_v26 = vadd.f32 %v1078_v7, %v1014_v37  ;;  %1331 = vst [vmem:[%s2702_s11 + $0x180] sm:$0xff] %v1267_v35  ;;  %v3737_v0 = vld [vmem:[#allocation43_spill] sm:$0xff] }
 0x1f9   : > { %v1646_v54 = vld [vmem:[%s2036_s27 + $0x1f8] sm:$0xff]  ;;  %v1206_v44 = vmul.f32 %v950_v22, %v719_v52  ;;  %v705_v36 = vpop.permute.xlu1 %704 }
 0x1fa   : > { %v1026_v63 = vmul.f32 %v1646_v54, %v834_v47  ;;  %v3730_v31 = vld [vmem:[#allocation46_spill] sm:$0xff]  ;;  %v1138_v3 = vadd.f32 %v1074_v25, %v1010_v8  ;;  %v959_v47 = vld [vmem:[#allocation7 + $0x1e0] sm:$0xff]  ;;  %v722_v8 = vsel %vm706_vm1, %v3205_v48, %v705_v36  ;;  %v770_v25 = vsel %vm706_vm1, %v705_v36, %v3737_v0 }
 0x1fb   : > { %v561_v20 = vsel %vm513_vm0, %v3730_v31, %v3729_v10  ;;  %v946_v15 = vld [vmem:[#allocation7 + $0x178] sm:$0xff]  ;;  %v577_v51 = vsel %vm513_vm0, %v3699_v1, %v3730_v31  ;;  %v1270_v24 = vadd.f32 %v1206_v44, %v1142_v26  ;;  %v1215_v22 = vmul.f32 %v959_v47, %v770_v25  ;;  %v3738_v54 = vld [vmem:[#allocation35_spill] sm:$0xff] }
 0x1fc   : > { %v898_v17 = vld [vmem:[#allocation5 + $0x1f8] sm:$0xff]  ;;  %v1202_v41 = vmul.f32 %v946_v15, %v718_v50  ;;  %v1087_v39 = vmul.f32 %v895_v6, %v561_v20  ;;  %v703_v43 = vpop.permute.xlu0 %702 }
 0x1fd   : > { %v3733_v21 = vld [vmem:[#allocation102_spill] sm:$0xff]  ;;  %v1090_v32 = vmul.f32 %v898_v17, %v577_v51  ;;  %1334 = vst [vmem:[%s2702_s11 + $0x198] sm:$0xff] %v1270_v24  ;;  %v721_v45 = vsel %vm706_vm1, %v3738_v54, %v703_v43 }
 0x1fe   : > { %v766_v1 = vsel %vm706_vm1, %v697_v2, %v3733_v21  ;;  %v830_v42 = vld [vmem:[#allocation2 + $0x1d8] sm:$0xff]  ;;  %v1266_v38 = vadd.f32 %v1202_v41, %v1138_v3  ;;  %v1151_v16 = vadd.f32 %v1087_v39, %v1023_v14  ;;  %v3739_v14 = vld [vmem:[#allocation37_spill] sm:$0xff] }
 0x1ff   : > { %v1199_v53 = vmul.f32 %v943_v61, %v766_v1  ;;  %v3734_v5 = vld [vmem:[#allocation62_spill] sm:$0xff]  ;;  %v1154_v28 = vadd.f32 %v1090_v32, %v1026_v63  ;;  %v769_v63 = vsel %vm706_vm1, %v703_v43, %v3739_v14 }
 0x200   : > { %v3735_v55 = vld [vmem:[#allocation26_spill] sm:$0xff]  ;;  %1330 = vst [vmem:[%s2702_s11 + $0x178] sm:$0xff] %v1266_v38  ;;  %v1211_v31 = vmul.f32 %v955_v11, %v769_v63  ;;  %v1279_v4 = vadd.f32 %v1215_v22, %v1151_v16 }
 0x201   : > { %v560_v40 = vsel %vm513_vm0, %v3735_v55, %v3734_v5  ;;  %v894_v27 = vld [vmem:[#allocation5 + $0x1d8] sm:$0xff]  ;;  %v576_v59 = vsel %vm513_vm0, %v3736_v49, %v3735_v55  ;;  %v1263_v12 = vadd.f32 %v1199_v53, %v1135_v23 }
 0x202   : > { %v1648_v62 = vld [vmem:[%s2036_s27 + $0x1d8] sm:$0xff]  ;;  %v1083_v33 = vmul.f32 %v891_v9, %v560_v40  ;;  %v1086_v37 = vmul.f32 %v894_v27, %v576_v59  ;;  %1343 = vst [vmem:[%s2702_s11 + $0x1e0] sm:$0xff] %v1279_v4 }
 0x203   : > { %v1022_v30 = vmul.f32 %v1648_v62, %v830_v42  ;;  %v962_v7 = vld [vmem:[#allocation7 + $0x1f8] sm:$0xff]  ;;  %1327 = vst [vmem:[%s2702_s11 + $0x160] sm:$0xff] %v1263_v12 }
 0x204   : > { %v958_v34 = vld [vmem:[#allocation7 + $0x1d8] sm:$0xff]  ;;  %v1218_v29 = vmul.f32 %v962_v7, %v722_v8  ;;  %v1147_v48 = vadd.f32 %v1083_v33, %v1019_v46 }
 0x205   : > { %v1150_v10 = vadd.f32 %v1086_v37, %v1022_v30  ;;  %v1214_v20 = vmul.f32 %v958_v34, %v721_v45 }
 0x206   : > { %v1282_v61 = vadd.f32 %v1218_v29, %v1154_v28  ;;  %v1275_v15 = vadd.f32 %v1211_v31, %v1147_v48 }
 0x207   : > { %v1278_v26 = vadd.f32 %v1214_v20, %v1150_v10 }
 0x208   : > { %1346 = vst [vmem:[%s2702_s11 + $0x1f8] sm:$0xff] %v1282_v61 }
 0x209   : > { %1339 = vst [vmem:[%s2702_s11 + $0x1c0] sm:$0xff] %v1275_v15 }
 0x20a   : > { %1342 = vst [vmem:[%s2702_s11 + $0x1d8] sm:$0xff] %v1278_v26 }
 0x20b   : > { %1796 = shalt.err (!%p1793_p0)
}
 0x20c   : > { %s1868_s6 = smov 512   ;;  %s1869_s27 = smov 32  }
 0x20d   : > { %1527 = dma.vmem_to_hbm [thread:$0]  (%p1999_p5), %s1364_s10, 8192, %s1366_s13, %s1348_s21, %s1868_s6, %s1868_s6, %s1869_s27  }
 0x20e PF: > { %s1380_s23 = sand.u32 1, %s1839_s15   ;;  %p1544_p3 = pnand %p1496_p10, %p1944_p6 }
 0x20f   : > { %s1381_s25 = scalar_lea.sflag [#allocation4], %s1380_s23 }
 0x210   : > { %p1545_p7 = pneg %p1544_p3 }
 0x212   : > { %1834 = dma.done.wait (%p1545_p7), %s1381_s25, 8192  }
 0x213   : > { %1836 = vsyncadd (%p1545_p7), %s1381_s25, 4294959104  ;;  %s22_s20 = sadd.s32 1, %s1859_s20   ;;  %s3740_s15 = smov %s1843_s16 }
 0x214   : > { %p19_p9 = scmp.ge.s32.totalorder %s22_s20, 4   ;;  %s3741_s16 = smov %s1847_s17 }
 0x215   : > { %s3742_s17 = smov %s2008_s14  ;;  %s3743_s18 = smov %s1855_s19 }
 0x216   : > { %s3744_s19 = smov %s3746_s5  ;;  %21 = sbr.rel (!%p19_p9) target bundleno = 11 (0xb), region = 97 }
 0x21b   :  { %1387 = vsyncpa [#allocation3], 1 }
 0x21c   :  { %1389 = vsyncpa [#allocation3 + $0x1], 1 }
 0x21d   :  { %1390 = vsyncpa [#allocation6], 1 }
 0x21e   :  { %1391 = vsyncpa [#allocation9], 1 }
 0x21f   :  { %1393 = vsyncpa [#allocation9 + $0x1], 1 }
 0x220   :  { %1394 = vsyncpa [#allocation4], 1 }
 0x221   :  { %1396 = vsyncpa [#allocation4 + $0x1], 1 }

</bundles_post_ra>
